<compile_context>
chip_gen: v6e
topology: v6e:2x2x1
jax: 0.10.0
libtpu: 0.0.40
codegen_flags: <defaults>
</compile_context>

<pallas_src>
import numpy as np
import jax
import jax.numpy as jnp
from jax import lax
from jax.experimental import pallas as pl
from jax.experimental.pallas import tpu as pltpu


def _round_up(x: int, m: int) -> int:
    return ((x + m - 1) // m) * m


def hsm_tree_kernel(idx_ref, w_ref, wt_ref, o_ref):
    """Hierarchical-softmax path probabilities for one batch tile.

    idx_ref : (P+1, TB) int32 -- row 0: leaf index of v, rows 1..P: root->leaf path of u
    w_ref   : (Sp, Dp) f32    -- zero-padded node-weight table (resident across grid steps)
    wt_ref  : (Dp, Sp) f32    -- its transpose (so both matmuls are canonical MXU dots)
    o_ref   : (1, TB)  f32    -- prod over path of sigmoid(<W[v_leaf], W[path_j]>), lane-dense
    """
    w = w_ref[...]                                   # (Sp, Dp)
    wt = wt_ref[...]                                 # (Dp, Sp)
    idx = idx_ref[...]                               # (P1, TB) int32
    sp = w.shape[0]
    tb = idx.shape[1]
    p1 = idx.shape[0]

    # node id along the sublane axis, batch along the lane axis
    node_iota = lax.broadcasted_iota(jnp.int32, (sp, tb), 0)

    # z^T = W^T @ one_hot(v_leaf): fuses the embedding row-gather onto the MXU.
    v_onehot = (node_iota == idx[0:1, :]).astype(w.dtype)            # (Sp, TB)
    z_t = jnp.dot(wt, v_onehot, preferred_element_type=jnp.float32)  # (Dp, TB)

    # logits of z against every tree node: (Sp, TB) on the MXU.
    logits = jnp.dot(w, z_t, preferred_element_type=jnp.float32)     # (Sp, TB)

    # numerically stable log-sigmoid (only exp/log/abs/min -> clean lowering)
    log_sig = jnp.minimum(logits, 0.0) - jnp.log(1.0 + jnp.exp(-jnp.abs(logits)))

    # per-(node, batch) path multiplicity (0/1) built from a short static compare loop
    cnt = jnp.zeros((sp, tb), jnp.float32)
    for j in range(1, p1):
        cnt = cnt + (node_iota == idx[j:j + 1, :]).astype(jnp.float32)

    # sum of selected log-sigmoids over the node (sublane) axis -> lane-dense (1, TB)
    total = jnp.sum(cnt * log_sig, axis=0, keepdims=True)
    o_ref[...] = jnp.exp(total)


class BinaryTreePallas:
    def __init__(self, num_vertices: int, n_dims: int, key, block_b: int = 256):
        assert block_b % 128 == 0, "batch tile must be a multiple of 128 (lane-dense output)"
        self.num_vertices = num_vertices
        self.depth = len(bin(num_vertices - 1)) - 2          # same formula as the torch module
        self.size = (1 << (self.depth + 1)) - 1
        self.n_dims = n_dims
        self.block_b = block_b

        # nn.Linear(n_dims, 1, bias=False) default init: U(-1/sqrt(n_dims), +1/sqrt(n_dims))
        bound = 1.0 / np.sqrt(n_dims)
        self.W = jax.random.uniform(
            key, (self.size, n_dims), jnp.float32, minval=-bound, maxval=bound
        )

        # Pad node axis / feature axis to multiples of 128.  Padded rows/cols are zero:
        # they are never selected by a valid path index and contribute 0 to dot products.
        self.size_p = _round_up(self.size, 128)
        self.dims_p = _round_up(self.n_dims, 128)
        w_pad = jnp.zeros((self.size_p, self.dims_p), jnp.float32)
        self.W_pad = w_pad.at[: self.size, : self.n_dims].set(self.W)
        self.Wt_pad = jnp.asarray(self.W_pad.T)

    def find_path(self, u_leaf: jnp.ndarray) -> jnp.ndarray:
        """Root->leaf node indices for each (already offset-shifted) target leaf index."""
        depth = self.depth
        t = (u_leaf + 1).astype(jnp.int32)                               # 1-indexed heap position
        mask = (2 ** jnp.arange(depth + 1)).astype(jnp.int32)
        bits = ((t[:, None] & mask[None, :]) != 0).astype(jnp.int32)[:, ::-1]  # MSB first
        bits = bits[:, 1:]                                               # drop leading 1 bit
        cols = [jnp.zeros_like(t)]                                       # root = index 0
        for i in range(depth):
            cols.append(cols[-1] * 2 + bits[:, i] + 1)                   # left=2j+1, right=2j+2
        return jnp.stack(cols, axis=-1)                                  # (B, depth+1)

    def __call__(self, collocation: jnp.ndarray) -> jnp.ndarray:
        offset = (1 << self.depth) - 1
        coll = collocation.astype(jnp.int32) + offset
        paths = self.find_path(coll[:, 1])                       # (B, depth+1) int32
        idx = jnp.concatenate([coll[:, :1], paths], axis=1)      # (B, P+1): [v_leaf, path...]
        B, P1 = idx.shape

        tb = self.block_b
        b_pad = _round_up(max(B, 1), tb)
        n_tiles = b_pad // tb
        # transpose so the batch sits on the lane axis; pad tail tile with zeros (discarded)
        idx_t = jnp.zeros((P1, b_pad), jnp.int32).at[:, :B].set(idx.T)

        sp, dp = self.size_p, self.dims_p
        cost = pl.CostEstimate(
            flops=4 * sp * dp * b_pad,                 # two MXU matmuls per batch element
            transcendentals=2 * sp * b_pad,            # exp/log in the log-sigmoid
            bytes_accessed=2 * sp * dp * 4 + b_pad * P1 * 4 + b_pad * 4,
        )

        out = pl.pallas_call(
            hsm_tree_kernel,
            out_shape=jax.ShapeDtypeStruct((1, b_pad), jnp.float32),
            grid=(n_tiles,),
            in_specs=[
                pl.BlockSpec((P1, tb), lambda i: (0, i)),   # per-tile [v_leaf; path] indices
                pl.BlockSpec((sp, dp), lambda i: (0, 0)),   # W   : same block -> stays resident
                pl.BlockSpec((dp, sp), lambda i: (0, 0)),   # W^T : same block -> stays resident
            ],
            out_specs=pl.BlockSpec((1, tb), lambda i: (0, i)),
            compiler_params=pltpu.CompilerParams(dimension_semantics=("parallel",)),
            cost_estimate=cost,
        )(idx_t, self.W_pad, self.Wt_pad)

        return out[0, :B]                                         # (B,) == torch .squeeze()


if __name__ == "__main__":
    key = jax.random.PRNGKey(0)
    k_w, k_c = jax.random.split(key)

    num_vertices = 13   # -> depth = 4, tree size = 31
    n_dims = 32
    batch = 8

    tree = BinaryTreePallas(num_vertices, n_dims, k_w)

    # collocation: (B, 2) int32 of (input vertex, target/context vertex) pairs
    collocation = jax.random.randint(k_c, (batch, 2), 0, num_vertices, dtype=jnp.int32)

    probs = tree(collocation)
    jax.block_until_ready(probs)

    # Pure-JAX reference for the same math (product of sigmoids along the path).
    offset = (1 << tree.depth) - 1
    coll = collocation.astype(jnp.int32) + offset
    paths = tree.find_path(coll[:, 1])
    z_ref = tree.W[coll[:, 0]]
    wp_ref = tree.W[paths]
    ref = jnp.prod(jax.nn.sigmoid(jnp.einsum("bd,bpd->bp", z_ref, wp_ref)), axis=-1)

    assert probs.shape == (batch,)
    assert np.allclose(np.asarray(probs), np.asarray(ref), rtol=1e-4, atol=1e-6)
    print("KERNEL_OK")
</pallas_src>

<mosaic_0001>
module attributes {stable_mosaic.version = 11 : i64} {
  func.func @hsm_tree_kernel(%arg0: i32, %arg1: memref<6x256xi32, #tpu.memory_space<vmem>>, %arg2: memref<128x128xf32, #tpu.memory_space<vmem>>, %arg3: memref<128x128xf32, #tpu.memory_space<vmem>>, %arg4: memref<1x256xf32, #tpu.memory_space<vmem>>) attributes {dimension_semantics = [#tpu.dimension_semantics<parallel>], iteration_bounds = array<i64: 1>, scalar_prefetch = 0 : i64, scratch_operands = 0 : i64, tpu.core_type = #tpu.core_type<tc>, window_params = [{transform_indices = @transform_0, window_bounds = array<i64: 6, 256>}, {pipeline_mode = #tpu.pipeline_mode<synchronous>, transform_indices = @transform_1, window_bounds = array<i64: 128, 128>}, {pipeline_mode = #tpu.pipeline_mode<synchronous>, transform_indices = @transform_2, window_bounds = array<i64: 128, 128>}, {transform_indices = @transform_3, window_bounds = array<i64: 1, 256>}]} {
    %c0 = arith.constant 0 : index
    %c0_0 = arith.constant 0 : index
    %0 = vector.load %arg2[%c0, %c0_0] : memref<128x128xf32, #tpu.memory_space<vmem>>, vector<128x128xf32>
    %c0_1 = arith.constant 0 : index
    %c0_2 = arith.constant 0 : index
    %1 = vector.load %arg3[%c0_1, %c0_2] : memref<128x128xf32, #tpu.memory_space<vmem>>, vector<128x128xf32>
    %c0_3 = arith.constant 0 : index
    %c0_4 = arith.constant 0 : index
    %2 = vector.load %arg1[%c0_3, %c0_4] : memref<6x256xi32, #tpu.memory_space<vmem>>, vector<6x256xi32>
    %3 = tpu.iota {dimensions = array<i32: 0>} : vector<128x256xi32>
    %4 = vector.extract_strided_slice %2 {offsets = [0, 0], sizes = [1, 256], strides = [1, 1]} : vector<6x256xi32> to vector<1x256xi32>
    %5 = vector.broadcast %4 : vector<1x256xi32> to vector<128x256xi32>
    %6 = arith.cmpi eq, %3, %5 : vector<128x256xi32>
    %7 = arith.extui %6 : vector<128x256xi1> to vector<128x256xi32>
    %8 = arith.sitofp %7 : vector<128x256xi32> to vector<128x256xf32>
    %cst = arith.constant dense<0.000000e+00> : vector<128x256xf32>
    %9 = tpu.matmul %1, %8, %cst {dimension_numbers = #tpu.dot_dimension_numbers<[1], [0], [0], [1], [0, 0, 1, 1], [], []>} : vector<128x128xf32>, vector<128x256xf32>, vector<128x256xf32> -> vector<128x256xf32>
    %cst_5 = arith.constant dense<0.000000e+00> : vector<128x256xf32>
    %10 = tpu.matmul %0, %9, %cst_5 {dimension_numbers = #tpu.dot_dimension_numbers<[1], [0], [0], [1], [0, 0, 1, 1], [], []>} : vector<128x128xf32>, vector<128x256xf32>, vector<128x256xf32> -> vector<128x256xf32>
    %cst_6 = arith.constant 0.000000e+00 : f32
    %11 = vector.broadcast %cst_6 : f32 to vector<128x256xf32>
    %12 = arith.minimumf %10, %11 : vector<128x256xf32>
    %13 = math.absf %10 : vector<128x256xf32>
    %cst_7 = arith.constant 0.000000e+00 : f32
    %14 = vector.broadcast %cst_7 : f32 to vector<128x256xf32>
    %15 = arith.subf %14, %13 : vector<128x256xf32>
    %16 = math.exp %15 : vector<128x256xf32>
    %cst_8 = arith.constant 1.000000e+00 : f32
    %17 = vector.broadcast %cst_8 : f32 to vector<128x256xf32>
    %18 = arith.addf %17, %16 : vector<128x256xf32>
    %19 = math.log %18 : vector<128x256xf32>
    %20 = arith.subf %12, %19 : vector<128x256xf32>
    %cst_9 = arith.constant 0.000000e+00 : f32
    %21 = vector.broadcast %cst_9 : f32 to vector<128x256xf32>
    %22 = vector.extract_strided_slice %2 {offsets = [1, 0], sizes = [1, 256], strides = [1, 1]} : vector<6x256xi32> to vector<1x256xi32>
    %23 = vector.broadcast %22 : vector<1x256xi32> to vector<128x256xi32>
    %24 = arith.cmpi eq, %3, %23 : vector<128x256xi32>
    %25 = arith.extui %24 : vector<128x256xi1> to vector<128x256xi32>
    %26 = arith.sitofp %25 : vector<128x256xi32> to vector<128x256xf32>
    %27 = arith.addf %21, %26 : vector<128x256xf32>
    %28 = vector.extract_strided_slice %2 {offsets = [2, 0], sizes = [1, 256], strides = [1, 1]} : vector<6x256xi32> to vector<1x256xi32>
    %29 = vector.broadcast %28 : vector<1x256xi32> to vector<128x256xi32>
    %30 = arith.cmpi eq, %3, %29 : vector<128x256xi32>
    %31 = arith.extui %30 : vector<128x256xi1> to vector<128x256xi32>
    %32 = arith.sitofp %31 : vector<128x256xi32> to vector<128x256xf32>
    %33 = arith.addf %27, %32 : vector<128x256xf32>
    %34 = vector.extract_strided_slice %2 {offsets = [3, 0], sizes = [1, 256], strides = [1, 1]} : vector<6x256xi32> to vector<1x256xi32>
    %35 = vector.broadcast %34 : vector<1x256xi32> to vector<128x256xi32>
    %36 = arith.cmpi eq, %3, %35 : vector<128x256xi32>
    %37 = arith.extui %36 : vector<128x256xi1> to vector<128x256xi32>
    %38 = arith.sitofp %37 : vector<128x256xi32> to vector<128x256xf32>
    %39 = arith.addf %33, %38 : vector<128x256xf32>
    %40 = vector.extract_strided_slice %2 {offsets = [4, 0], sizes = [1, 256], strides = [1, 1]} : vector<6x256xi32> to vector<1x256xi32>
    %41 = vector.broadcast %40 : vector<1x256xi32> to vector<128x256xi32>
    %42 = arith.cmpi eq, %3, %41 : vector<128x256xi32>
    %43 = arith.extui %42 : vector<128x256xi1> to vector<128x256xi32>
    %44 = arith.sitofp %43 : vector<128x256xi32> to vector<128x256xf32>
    %45 = arith.addf %39, %44 : vector<128x256xf32>
    %46 = vector.extract_strided_slice %2 {offsets = [5, 0], sizes = [1, 256], strides = [1, 1]} : vector<6x256xi32> to vector<1x256xi32>
    %47 = vector.broadcast %46 : vector<1x256xi32> to vector<128x256xi32>
    %48 = arith.cmpi eq, %3, %47 : vector<128x256xi32>
    %49 = arith.extui %48 : vector<128x256xi1> to vector<128x256xi32>
    %50 = arith.sitofp %49 : vector<128x256xi32> to vector<128x256xf32>
    %51 = arith.addf %45, %50 : vector<128x256xf32>
    %52 = arith.mulf %51, %20 : vector<128x256xf32>
    %cst_10 = arith.constant dense<0.000000e+00> : vector<256xf32>
    %53 = vector.multi_reduction <add>, %52, %cst_10 [0] : vector<128x256xf32> to vector<256xf32>
    %54 = vector.shape_cast %53 : vector<256xf32> to vector<1x256xf32>
    %55 = math.exp %54 : vector<1x256xf32>
    %c0_11 = arith.constant 0 : index
    %c0_12 = arith.constant 0 : index
    %56 = vector.load %arg4[%c0_11, %c0_12] : memref<1x256xf32, #tpu.memory_space<vmem>>, vector<1x256xf32>
    tpu.vector_store %arg4[%c0_11, %c0_12], %55 {strides = array<i32>} : memref<1x256xf32, #tpu.memory_space<vmem>>, vector<1x256xf32>,
    return
  }
  func.func @transform_0(%arg0: i32) -> (i32, i32) {
    %c0_i32 = arith.constant 0 : i32
    %c0_i32_0 = arith.constant 0 : i32
    return %c0_i32, %arg0 : i32, i32
  }
  func.func @transform_1(%arg0: i32) -> (i32, i32) {
    %c0_i32 = arith.constant 0 : i32
    %c0_i32_0 = arith.constant 0 : i32
    %c0_i32_1 = arith.constant 0 : i32
    return %c0_i32, %c0_i32_0 : i32, i32
  }
  func.func @transform_2(%arg0: i32) -> (i32, i32) {
    %c0_i32 = arith.constant 0 : i32
    %c0_i32_0 = arith.constant 0 : i32
    %c0_i32_1 = arith.constant 0 : i32
    return %c0_i32, %c0_i32_0 : i32, i32
  }
  func.func @transform_3(%arg0: i32) -> (i32, i32) {
    %c0_i32 = arith.constant 0 : i32
    %c0_i32_0 = arith.constant 0 : i32
    return %c0_i32, %arg0 : i32, i32
  }
}

</mosaic_0001>

<bundles_post_ra>
// kernel: tpu_custom_call.1
= control target key start
LH: loop header
LB: loop body
LE: loop exit
PB: predicated region body
PF: predicated region fallthrough
CT: control target
= control target key end

     0   :  { %8 = vsyncpa [#allocation3], 0  ;;  %s3161_s0 = inlined_call_operand.hbm [shape: s32[6,256], index: 0, kind: input, shape index: {}]   ;;  %s3162_s1 = inlined_call_operand.hbm [shape: f32[128,128], index: 1, kind: input, shape index: {}]   ;;  %s3163_s2 = inlined_call_operand.hbm [shape: f32[128,128], index: 2, kind: input, shape index: {}]   ;;  %s3164_s3 = inlined_call_operand.hbm [shape: f32[1,256], index: 3, kind: output, shape index: {}]  }
   0x1   :  { %9 = vsyncpa [#allocation6], 0 }
   0x2   :  { %10 = vsyncpa [#allocation4], 0  ;;  %s2067_s12 = smov [#allocation5]  }
   0x3   :  { %s26_s13 = sshll.u32 %s2067_s12, 4  ;;  %s27_s13 = int_to_ptr.vmem [resolvable:$true] %s26_s13 }
   0x4   :  { %s1989_s14 = scalar_lea.vmem %s27_s13, 2048  ;;  %p1994_p1 = scmp.lt.s32.totalorder %s27_s13, %s27_s13 }
   0x5   :  { %p1990_p0 = scmp.ne.s32.totalorder %s27_s13, %s1989_s14  ;;  %p1995_p2 = scmp.lt.s32.totalorder %s1989_s14, %s1989_s14 }
   0x7   :  { %p1996_p3 = por %p1995_p2, %p1994_p1 }
   0x9   :  { %p1997_p4 = pnand %p1996_p3, %p1990_p0 }
   0xb   :  { %2000 = shalt.err (!%p1997_p4)
}
   0xc   :  { %s2068_s15 = smov 128   ;;  %s2069_s16 = smov 8  }
   0xd   :  { %32 = dma.hbm_to_vmem [thread:$0]  %s3162_s1, 2048, %s27_s13, [#allocation6], %s2068_s15, %s2068_s15, %s2069_s16  }
   0xe   :  { %s2070_s19 = smov [#allocation2]   ;;  %s2071_s21 = smov [#allocation7]  }
   0xf   :  { %s17_s20 = sshll.u32 %s2070_s19, 4  ;;  %s38_s22 = sshll.u32 %s2071_s21, 4  ;;  %s18_s20 = int_to_ptr.vmem [resolvable:$true] %s17_s20  ;;  %s39_s22 = int_to_ptr.vmem [resolvable:$true] %s38_s22 }
  0x10   :  { %s2009_s23 = scalar_lea.vmem %s18_s20, 256  ;;  %p2014_p6 = scmp.lt.s32.totalorder %s18_s20, %s18_s20 }
  0x11   :  { %p2010_p5 = scmp.ne.s32.totalorder %s18_s20, %s2009_s23  ;;  %p2015_p7 = scmp.lt.s32.totalorder %s2009_s23, %s2009_s23 }
  0x13   :  { %p2016_p8 = por %p2015_p7, %p2014_p6 }
  0x15   :  { %p2017_p9 = pnand %p2016_p8, %p2010_p5 }
  0x17   :  { %2020 = shalt.err (!%p2017_p9)
}
  0x18   :  { %20 = dma.hbm_to_vmem [thread:$0]  %s3161_s0, 256, %s18_s20, [#allocation3]  }
  0x19   :  { %s2029_s26 = scalar_lea.vmem %s39_s22, 2048  ;;  %p2034_p11 = scmp.lt.s32.totalorder %s39_s22, %s39_s22 }
  0x1a   :  { %p2030_p10 = scmp.ne.s32.totalorder %s39_s22, %s2029_s26  ;;  %p2035_p12 = scmp.lt.s32.totalorder %s2029_s26, %s2029_s26 }
  0x1c   :  { %p2036_p13 = por %p2035_p12, %p2034_p11 }
  0x1e   :  { %p2037_p0 = pnand %p2036_p13, %p2030_p10 }
  0x20   :  { %2040 = shalt.err (!%p2037_p0)
}
  0x21   :  { %44 = dma.hbm_to_vmem [thread:$0]  %s3163_s2, 2048, %s39_s22, [#allocation6], %s2068_s15, %s2068_s15, %s2069_s16  }
  0x22   :  { %2061 = dma.done.wait [#allocation3], 256  }
  0x23   :  { %2062 = vsyncadd [#allocation3], 4294967040 }
  0x24   :  { %2063 = dma.done.wait [#allocation6], 4096  }
  0x25   :  { %2064 = vsyncadd [#allocation6], 4294963200  ;;  %v3165_v0 = vlaneseq  ;;  %v3167_v1 = vmov 0.0   ;;  %v2117_v6 = vld [vmem:[#allocation2 + $0x8] sm:$0x3f]  ;;  %v2073_v12 = vmov 1.0  }
  0x26   :  { %273 = vmatprep.mubr.f32.mxu0 %v3167_v1  ;;  %434 = vmatprep.mubr.f32.mxu1 %v3167_v1  ;;  %v2119_v7 = vld [vmem:[#allocation2] sm:$0x3f]  ;;  %v70_v24 = vld [vmem:[#allocation7] sm:$0xff]  ;;  %v71_v25 = vld [vmem:[#allocation7 + $0x8] sm:$0xff]  ;;  %s2075_s0 = smov [#allocation8]  }
  0x27   :  { %v2108_v2 = vshrl.u32 %v3165_v0, 7  ;;  %v72_v26 = vld [vmem:[#allocation7 + $0x10] sm:$0xff]  ;;  %v73_v27 = vld [vmem:[#allocation7 + $0x18] sm:$0xff]  ;;  %v74_v28 = vld [vmem:[#allocation7 + $0x20] sm:$0xff]  ;;  %s1606_s2 = sshll.u32 %s2075_s0, 4  ;;  %s1607_s2 = int_to_ptr.vmem [resolvable:$true] %s1606_s2 }
  0x28   :  { %v75_v29 = vld [vmem:[#allocation7 + $0x28] sm:$0xff]  ;;  %v76_v30 = vld [vmem:[#allocation7 + $0x30] sm:$0xff]  ;;  %v77_v31 = vld [vmem:[#allocation7 + $0x38] sm:$0xff]  ;;  %s2041_s28 = scalar_lea.vmem %s1607_s2, 32  ;;  %p2046_p2 = scmp.lt.s32.totalorder %s1607_s2, %s1607_s2 }
  0x29   :  { %3175 = vst [vmem:[#allocation12_spill] sm:$0xff] %v2108_v2  ;;  %v107_v3 = vsub.s32 0, %v2108_v2  ;;  %v2112_v4 = vadd.s32 120, %v2108_v2  ;;  %v2115_v5 = vadd.s32 112, %v2108_v2  ;;  %v2128_v10 = vadd.s32 104, %v2108_v2  ;;  %v78_v32 = vld [vmem:[#allocation7 + $0x40] sm:$0xff]  ;;  %p2042_p1 = scmp.ne.s32.totalorder %s1607_s2, %s2041_s28  ;;  %p2047_p3 = scmp.lt.s32.totalorder %s2041_s28, %s2041_s28 }
  0x2a   :  { %v2137_v11 = vadd.s32 96, %v2108_v2  ;;  %v2146_v13 = vadd.s32 88, %v2108_v2  ;;  %v2155_v14 = vadd.s32 80, %v2108_v2  ;;  %v2164_v15 = vadd.s32 72, %v2108_v2  ;;  %v79_v33 = vld [vmem:[#allocation7 + $0x48] sm:$0xff]  ;;  %v80_v34 = vld [vmem:[#allocation7 + $0x50] sm:$0xff] }
  0x2b   :  { %v2122_v8 = vrot.slane %v2117_v6, %v107_v3  ;;  %v2125_v9 = vrot.slane %v2119_v7, %v107_v3  ;;  %v2173_v16 = vadd.s32 64, %v2108_v2  ;;  %v2182_v17 = vadd.s32 56, %v2108_v2  ;;  %v81_v35 = vld [vmem:[#allocation7 + $0x58] sm:$0xff]  ;;  %v82_v36 = vld [vmem:[#allocation7 + $0x60] sm:$0xff]  ;;  %v83_v37 = vld [vmem:[#allocation7 + $0x68] sm:$0xff]  ;;  %p2048_p4 = por %p2047_p3, %p2046_p2 }
  0x2c   :  { %v2191_v18 = vadd.s32 48, %v2108_v2  ;;  %v2200_v19 = vadd.s32 40, %v2108_v2  ;;  %v2209_v20 = vadd.s32 32, %v2108_v2  ;;  %v2218_v21 = vadd.s32 24, %v2108_v2  ;;  %v84_v38 = vld [vmem:[#allocation7 + $0x70] sm:$0xff]  ;;  %v85_v39 = vld [vmem:[#allocation7 + $0x78] sm:$0xff] }
  0x2d   :  { %vm144_vm0 = vcmp.eq.s32.totalorder %v2112_v4, %v2122_v8  ;;  %vm143_vm1 = vcmp.eq.s32.totalorder %v2112_v4, %v2125_v9  ;;  %vm142_vm2 = vcmp.eq.s32.totalorder %v2115_v5, %v2122_v8  ;;  %vm141_vm3 = vcmp.eq.s32.totalorder %v2115_v5, %v2125_v9  ;;  %p2049_p5 = pnand %p2048_p4, %p2042_p1 }
  0x2e   :  { %1648 = vmatprep.subr.msk.mxu0 %vm144_vm0, %v2073_v12  ;;  %vm140_vm4 = vcmp.eq.s32.totalorder %v2128_v10, %v2122_v8  ;;  %vm139_vm5 = vcmp.eq.s32.totalorder %v2128_v10, %v2125_v9  ;;  %vm138_vm6 = vcmp.eq.s32.totalorder %v2137_v11, %v2122_v8  ;;  %vm137_vm7 = vcmp.eq.s32.totalorder %v2137_v11, %v2125_v9 }
  0x2f   :  { %1649 = vmatpush1.msk.msra.mxu0 %vm143_vm1, %v2073_v12  ;;  %vm136_vm8 = vcmp.eq.s32.totalorder %v2146_v13, %v2122_v8  ;;  %vm135_vm9 = vcmp.eq.s32.totalorder %v2146_v13, %v2125_v9  ;;  %vm134_vm10 = vcmp.eq.s32.totalorder %v2155_v14, %v2122_v8  ;;  %vm133_vm11 = vcmp.eq.s32.totalorder %v2155_v14, %v2125_v9 }
  0x30   :  { %1650 = vmatprep.subr.msk.mxu0 %vm142_vm2, %v2073_v12  ;;  %vm132_vm12 = vcmp.eq.s32.totalorder %v2164_v15, %v2122_v8  ;;  %vm131_vm13 = vcmp.eq.s32.totalorder %v2164_v15, %v2125_v9  ;;  %vm130_vm14 = vcmp.eq.s32.totalorder %v2173_v16, %v2122_v8  ;;  %vm129_vm15 = vcmp.eq.s32.totalorder %v2173_v16, %v2125_v9 }
  0x31   :  { %1651 = vmatpush1.msk.msra.mxu0 %vm141_vm3, %v2073_v12  ;;  %vm128_vm0 = vcmp.eq.s32.totalorder %v2182_v17, %v2122_v8  ;;  %vm127_vm1 = vcmp.eq.s32.totalorder %v2182_v17, %v2125_v9  ;;  %vm126_vm2 = vcmp.eq.s32.totalorder %v2191_v18, %v2122_v8  ;;  %vm125_vm3 = vcmp.eq.s32.totalorder %v2191_v18, %v2125_v9 }
  0x32   :  { %1652 = vmatprep.subr.msk.mxu0 %vm140_vm4, %v2073_v12  ;;  %vm124_vm4 = vcmp.eq.s32.totalorder %v2200_v19, %v2122_v8  ;;  %v2227_v22 = vadd.s32 16, %v2108_v2  ;;  %v2236_v23 = vadd.s32 8, %v2108_v2 }
  0x33   :  { %1653 = vmatpush1.msk.msra.mxu0 %vm139_vm5, %v2073_v12  ;;  %vm123_vm5 = vcmp.eq.s32.totalorder %v2200_v19, %v2125_v9 }
  0x34   :  { %1654 = vmatprep.subr.msk.mxu0 %vm138_vm6, %v2073_v12  ;;  %vm122_vm6 = vcmp.eq.s32.totalorder %v2209_v20, %v2122_v8 }
  0x35   :  { %1655 = vmatpush1.msk.msra.mxu0 %vm137_vm7, %v2073_v12  ;;  %vm121_vm7 = vcmp.eq.s32.totalorder %v2209_v20, %v2125_v9 }
  0x36   :  { %1656 = vmatprep.subr.msk.mxu0 %vm136_vm8, %v2073_v12  ;;  %vm120_vm8 = vcmp.eq.s32.totalorder %v2218_v21, %v2122_v8 }
  0x37   :  { %1657 = vmatpush1.msk.msra.mxu0 %vm135_vm9, %v2073_v12  ;;  %vm119_vm9 = vcmp.eq.s32.totalorder %v2218_v21, %v2125_v9 }
  0x38   :  { %1658 = vmatprep.subr.msk.mxu0 %vm134_vm10, %v2073_v12  ;;  %vm118_vm10 = vcmp.eq.s32.totalorder %v2227_v22, %v2122_v8 }
  0x39   :  { %1659 = vmatpush1.msk.msra.mxu0 %vm133_vm11, %v2073_v12  ;;  %vm117_vm11 = vcmp.eq.s32.totalorder %v2227_v22, %v2125_v9 }
  0x3a   :  { %1660 = vmatprep.subr.msk.mxu0 %vm132_vm12, %v2073_v12  ;;  %vm116_vm12 = vcmp.eq.s32.totalorder %v2236_v23, %v2122_v8 }
  0x3b   :  { %1661 = vmatpush1.msk.msra.mxu0 %vm131_vm13, %v2073_v12  ;;  %vm115_vm13 = vcmp.eq.s32.totalorder %v2236_v23, %v2125_v9 }
  0x3c   :  { %1662 = vmatprep.subr.msk.mxu0 %vm130_vm14, %v2073_v12  ;;  %vm114_vm14 = vcmp.eq.s32.totalorder %v2108_v2, %v2122_v8 }
  0x3d   :  { %1663 = vmatpush1.msk.msra.mxu0 %vm129_vm15, %v2073_v12  ;;  %vm113_vm15 = vcmp.eq.s32.totalorder %v2108_v2, %v2125_v9 }
  0x3e   :  { %1664 = vmatprep.subr.msk.mxu0 %vm128_vm0, %v2073_v12 }
  0x3f   :  { %1665 = vmatpush1.msk.msra.mxu0 %vm127_vm1, %v2073_v12 }
  0x40   :  { %1666 = vmatprep.subr.msk.mxu0 %vm126_vm2, %v2073_v12 }
  0x41   :  { %1667 = vmatpush1.msk.msra.mxu0 %vm125_vm3, %v2073_v12 }
  0x42   :  { %1668 = vmatprep.subr.msk.mxu0 %vm124_vm4, %v2073_v12 }
  0x43   :  { %1669 = vmatpush1.msk.msra.mxu0 %vm123_vm5, %v2073_v12 }
  0x44   :  { %1670 = vmatprep.subr.msk.mxu0 %vm122_vm6, %v2073_v12 }
  0x45   :  { %1671 = vmatpush1.msk.msra.mxu0 %vm121_vm7, %v2073_v12 }
  0x46   :  { %1672 = vmatprep.subr.msk.mxu0 %vm120_vm8, %v2073_v12 }
  0x47   :  { %1673 = vmatpush1.msk.msra.mxu0 %vm119_vm9, %v2073_v12 }
  0x48   :  { %1674 = vmatprep.subr.msk.mxu0 %vm118_vm10, %v2073_v12 }
  0x49   :  { %1675 = vmatpush1.msk.msra.mxu0 %vm117_vm11, %v2073_v12 }
  0x4a   :  { %1676 = vmatprep.subr.msk.mxu0 %vm116_vm12, %v2073_v12 }
  0x4b   :  { %1677 = vmatpush1.msk.msra.mxu0 %vm115_vm13, %v2073_v12 }
  0x4c   :  { %1678 = vmatprep.subr.msk.mxu0 %vm114_vm14, %v2073_v12 }
  0x4d   :  { %1679 = vmatpush1.msk.msra.mxu0 %vm113_vm15, %v2073_v12 }
  0x4e   :  { %274 = vmatmul.mubr.f32.vlgmr.msra.gmra.mxu0 %v70_v24 }
  0x4f   :  { %279 = vmatprep.mubr.f32.mxu0 %v3167_v1 }
  0x52   :  { %280 = vmatmul.mubr.f32.gmra.mxu0 %v71_v25 }
  0x53   :  { %285 = vmatprep.mubr.f32.mxu0 %v3167_v1 }
  0x56   :  { %286 = vmatmul.mubr.f32.gmra.mxu0 %v72_v26 }
  0x57   :  { %291 = vmatprep.mubr.f32.mxu0 %v3167_v1 }
  0x5a   :  { %292 = vmatmul.mubr.f32.gmra.mxu0 %v73_v27 }
  0x5b   :  { %297 = vmatprep.mubr.f32.mxu0 %v3167_v1 }
  0x5e   :  { %298 = vmatmul.mubr.f32.gmra.mxu0 %v74_v28  ;;  %v54_v28 = vld [vmem:[#allocation5] sm:$0xff] }
  0x5f   :  { %303 = vmatprep.mubr.f32.mxu0 %v3167_v1 }
  0x62   :  { %304 = vmatmul.mubr.f32.gmra.mxu0 %v75_v29  ;;  %v55_v29 = vld [vmem:[#allocation5 + $0x8] sm:$0xff] }
  0x63   :  { %309 = vmatprep.mubr.f32.mxu0 %v3167_v1 }
  0x66   :  { %310 = vmatmul.mubr.f32.gmra.mxu0 %v76_v30  ;;  %v56_v30 = vld [vmem:[#allocation5 + $0x10] sm:$0xff] }
  0x67   :  { %315 = vmatprep.mubr.f32.mxu0 %v3167_v1 }
  0x6a   :  { %316 = vmatmul.mubr.f32.gmra.mxu0 %v77_v31  ;;  %v57_v31 = vld [vmem:[#allocation5 + $0x18] sm:$0xff] }
  0x6b   :  { %321 = vmatprep.mubr.f32.mxu0 %v3167_v1 }
  0x6e   :  { %322 = vmatmul.mubr.f32.gmra.mxu0 %v78_v32  ;;  %v58_v32 = vld [vmem:[#allocation5 + $0x20] sm:$0xff] }
  0x6f   :  { %327 = vmatprep.mubr.f32.mxu0 %v3167_v1 }
  0x72   :  { %328 = vmatmul.mubr.f32.gmra.mxu0 %v79_v33  ;;  %v59_v33 = vld [vmem:[#allocation5 + $0x28] sm:$0xff] }
  0x73   :  { %333 = vmatprep.mubr.f32.mxu0 %v3167_v1 }
  0x76   :  { %334 = vmatmul.mubr.f32.gmra.mxu0 %v80_v34  ;;  %v60_v34 = vld [vmem:[#allocation5 + $0x30] sm:$0xff] }
  0x77   :  { %339 = vmatprep.mubr.f32.mxu0 %v3167_v1 }
  0x7a   :  { %340 = vmatmul.mubr.f32.gmra.mxu0 %v81_v35  ;;  %v61_v35 = vld [vmem:[#allocation5 + $0x38] sm:$0xff] }
  0x7b   :  { %345 = vmatprep.mubr.f32.mxu0 %v3167_v1 }
  0x7e   :  { %346 = vmatmul.mubr.f32.gmra.mxu0 %v82_v36  ;;  %v62_v36 = vld [vmem:[#allocation5 + $0x40] sm:$0xff] }
  0x7f   :  { %351 = vmatprep.mubr.f32.mxu0 %v3167_v1 }
  0x82   :  { %352 = vmatmul.mubr.f32.gmra.mxu0 %v83_v37  ;;  %v63_v37 = vld [vmem:[#allocation5 + $0x48] sm:$0xff] }
  0x83   :  { %357 = vmatprep.mubr.f32.mxu0 %v3167_v1 }
  0x86   :  { %358 = vmatmul.mubr.f32.gmra.mxu0 %v84_v38  ;;  %v64_v38 = vld [vmem:[#allocation5 + $0x50] sm:$0xff] }
  0x87   :  { %363 = vmatprep.mubr.f32.mxu0 %v3167_v1 }
  0x8a   :  { %364 = vmatmul.mubr.f32.gmra.mxu0 %v85_v39  ;;  %v65_v39 = vld [vmem:[#allocation5 + $0x58] sm:$0xff] }
 0x10e   :  { %v2277_v40 = vpop.f32.mrf.mxu0 }
 0x110   :  { %v277_v41 = vpop.f32.mrf.mxu0 }
 0x112   :  { %v281_v42 = vpop.f32.mrf.mxu0 }
 0x114   :  { %v283_v43 = vpop.f32.mrf.mxu0 }
 0x116   :  { %v287_v44 = vpop.f32.mrf.mxu0 }
 0x118   :  { %v289_v45 = vpop.f32.mrf.mxu0 }
 0x11a   :  { %v293_v46 = vpop.f32.mrf.mxu0 }
 0x11c   :  { %v295_v47 = vpop.f32.mrf.mxu0 }
 0x11e   :  { %v299_v48 = vpop.f32.mrf.mxu0 }
 0x120   :  { %v301_v49 = vpop.f32.mrf.mxu0 }
 0x122   :  { %v305_v50 = vpop.f32.mrf.mxu0 }
 0x124   :  { %v307_v51 = vpop.f32.mrf.mxu0 }
 0x126   :  { %v311_v52 = vpop.f32.mrf.mxu0 }
 0x128   :  { %v313_v53 = vpop.f32.mrf.mxu0 }
 0x12a   :  { %v317_v54 = vpop.f32.mrf.mxu0 }
 0x12c   :  { %v319_v55 = vpop.f32.mrf.mxu0 }
 0x12e   :  { %v323_v56 = vpop.f32.mrf.mxu0 }
 0x130   :  { %v325_v57 = vpop.f32.mrf.mxu0 }
 0x132   :  { %v329_v58 = vpop.f32.mrf.mxu0 }
 0x134   :  { %v331_v59 = vpop.f32.mrf.mxu0 }
 0x136   :  { %v335_v60 = vpop.f32.mrf.mxu0 }
 0x138   :  { %v337_v61 = vpop.f32.mrf.mxu0 }
 0x13a   :  { %v341_v62 = vpop.f32.mrf.mxu0 }
 0x13c   :  { %v343_v63 = vpop.f32.mrf.mxu0 }
 0x13e   :  { %v347_v3 = vpop.f32.mrf.mxu0 }
 0x140   :  { %v349_v8 = vpop.f32.mrf.mxu0 }
 0x142   :  { %v353_v9 = vpop.f32.mrf.mxu0 }
 0x144   :  { %v355_v12 = vpop.f32.mrf.mxu0 }
 0x146   :  { %v359_v24 = vpop.f32.mrf.mxu0 }
 0x148   :  { %v361_v25 = vpop.f32.mrf.mxu0 }
 0x14a   :  { %v365_v26 = vpop.f32.mrf.mxu0 }
 0x14c   :  { %v367_v27 = vpop.f32.mrf.mxu0 }
 0x14d   :  { %370 = vmatprep.subr.mxu1 %v367_v27 }
 0x14e   :  { %371 = vmatpush1.msra.mxu1 %v365_v26 }
 0x14f   :  { %372 = vmatprep.subr.mxu1 %v361_v25 }
 0x150   :  { %373 = vmatpush1.msra.mxu1 %v359_v24 }
 0x151   :  { %374 = vmatprep.subr.mxu1 %v355_v12 }
 0x152   :  { %375 = vmatpush1.msra.mxu1 %v353_v9 }
 0x153   :  { %376 = vmatprep.subr.mxu1 %v349_v8 }
 0x154   :  { %377 = vmatpush1.msra.mxu1 %v347_v3 }
 0x155   :  { %378 = vmatprep.subr.mxu1 %v343_v63 }
 0x156   :  { %379 = vmatpush1.msra.mxu1 %v341_v62 }
 0x157   :  { %380 = vmatprep.subr.mxu1 %v337_v61 }
 0x158   :  { %381 = vmatpush1.msra.mxu1 %v335_v60 }
 0x159   :  { %382 = vmatprep.subr.mxu1 %v331_v59 }
 0x15a   :  { %383 = vmatpush1.msra.mxu1 %v329_v58 }
 0x15b   :  { %384 = vmatprep.subr.mxu1 %v325_v57  ;;  %v1365_v57 = vsub.s32 5, %v2108_v2 }
 0x15c   :  { %385 = vmatpush1.msra.mxu1 %v323_v56 }
 0x15d   :  { %386 = vmatprep.subr.mxu1 %v319_v55  ;;  %v2348_v63 = vrot.slane %v2119_v7, %v1365_v57  ;;  %v2354_v12 = vrot.slane %v2117_v6, %v1365_v57 }
 0x15e   :  { %387 = vmatpush1.msra.mxu1 %v317_v54 }
 0x15f   :  { %388 = vmatprep.subr.mxu1 %v313_v53  ;;  %3177 = vst [vmem:[#allocation14_spill] sm:$0xff] %v2348_v63  ;;  %3178 = vst [vmem:[#allocation15_spill] sm:$0xff] %v2354_v12  ;;  %vm1371_vm11 = vcmp.eq.s32.totalorder %v2108_v2, %v2348_v63  ;;  %vm1372_vm14 = vcmp.eq.s32.totalorder %v2108_v2, %v2354_v12 }
 0x160   :  { %389 = vmatpush1.msra.mxu1 %v311_v52  ;;  %v1229_v52 = vsub.s32 4, %v2108_v2 }
 0x161   :  { %390 = vmatprep.subr.mxu1 %v307_v51 }
 0x162   :  { %391 = vmatpush1.msra.mxu1 %v305_v50  ;;  %v2330_v56 = vrot.slane %v2119_v7, %v1229_v52  ;;  %v2339_v62 = vrot.slane %v2117_v6, %v1229_v52 }
 0x163   :  { %392 = vmatprep.subr.mxu1 %v301_v49 }
 0x164   :  { %393 = vmatpush1.msra.mxu1 %v299_v48  ;;  %v1093_v48 = vsub.s32 3, %v2108_v2  ;;  %3176 = vst [vmem:[#allocation13_spill] sm:$0xff] %v2330_v56  ;;  %vm1235_vm8 = vcmp.eq.s32.totalorder %v2108_v2, %v2330_v56  ;;  %vm1236_vm9 = vcmp.eq.s32.totalorder %v2108_v2, %v2339_v62  ;;  %vm1237_vm15 = vcmp.eq.s32.totalorder %v2236_v23, %v2330_v56 }
 0x165   :  { %394 = vmatprep.subr.mxu1 %v295_v47  ;;  %v1776_v26 = vsel %vm1235_vm8, 1.0, %v3167_v1 }
 0x166   :  { %395 = vmatpush1.msra.mxu1 %v293_v46  ;;  %v2315_v51 = vrot.slane %v2119_v7, %v1093_v48  ;;  %v2325_v55 = vrot.slane %v2117_v6, %v1093_v48 }
 0x167   :  { %396 = vmatprep.subr.mxu1 %v289_v45  ;;  %v957_v45 = vsub.s32 2, %v2108_v2 }
 0x168   :  { %397 = vmatpush1.msra.mxu1 %v287_v44  ;;  %v821_v44 = vsub.s32 1, %v2108_v2  ;;  %vm1099_vm4 = vcmp.eq.s32.totalorder %v2108_v2, %v2315_v51  ;;  %vm1100_vm5 = vcmp.eq.s32.totalorder %v2108_v2, %v2325_v55  ;;  %vm1101_vm10 = vcmp.eq.s32.totalorder %v2236_v23, %v2315_v51 }
 0x169   :  { %398 = vmatprep.subr.mxu1 %v283_v43  ;;  %v69_v43 = vld [vmem:[#allocation5 + $0x78] sm:$0xff]  ;;  %v2301_v47 = vrot.slane %v2119_v7, %v957_v45  ;;  %v2310_v50 = vrot.slane %v2117_v6, %v957_v45  ;;  %v1744_v61 = vsel %vm1099_vm4, 1.0, %v3167_v1  ;;  %v1745_v9 = vsel %vm1100_vm5, 1.0, %v3167_v1 }
 0x16a   :  { %399 = vmatpush1.msra.mxu1 %v281_v42  ;;  %v68_v42 = vld [vmem:[#allocation5 + $0x70] sm:$0xff]  ;;  %v2298_v46 = vrot.slane %v2119_v7, %v821_v44  ;;  %v2307_v49 = vrot.slane %v2117_v6, %v821_v44  ;;  %v1777_v6 = vsel %vm1236_vm9, 1.0, %v3167_v1  ;;  %vm1238_vm4 = vcmp.eq.s32.totalorder %v2236_v23, %v2339_v62 }
 0x16b   :  { %400 = vmatprep.subr.mxu1 %v277_v41  ;;  %v67_v41 = vld [vmem:[#allocation5 + $0x68] sm:$0xff]  ;;  %vm963_vm1 = vcmp.eq.s32.totalorder %v2108_v2, %v2301_v47  ;;  %vm964_vm3 = vcmp.eq.s32.totalorder %v2108_v2, %v2310_v50  ;;  %vm965_vm7 = vcmp.eq.s32.totalorder %v2236_v23, %v2301_v47  ;;  %vm966_vm13 = vcmp.eq.s32.totalorder %v2236_v23, %v2310_v50 }
 0x16c   :  { %401 = vmatpush1.msra.mxu1 %v2277_v40  ;;  %v66_v40 = vld [vmem:[#allocation5 + $0x60] sm:$0xff]  ;;  %vm827_vm0 = vcmp.eq.s32.totalorder %v2108_v2, %v2298_v46  ;;  %v1712_v54 = vsel %vm963_vm1, 1.0, %v3167_v1  ;;  %vm828_vm2 = vcmp.eq.s32.totalorder %v2108_v2, %v2307_v49  ;;  %v1713_v60 = vsel %vm964_vm3, 1.0, %v3167_v1 }
 0x16d   :  { %435 = vmatmul.mubr.f32.vlgmr.msra.gmra.mxu1 %v54_v28  ;;  %v1680_v53 = vsel %vm827_vm0, 1.0, %v3167_v1  ;;  %v1681_v59 = vsel %vm828_vm2, 1.0, %v3167_v1  ;;  %vm829_vm6 = vcmp.eq.s32.totalorder %v2236_v23, %v2298_v46  ;;  %v1714_v25 = vsel %vm965_vm7, 1.0, %v3167_v1 }
 0x16e   :  { %440 = vmatprep.mubr.f32.mxu1 %v3167_v1  ;;  %v1059_v58 = vadd.f32 %v1712_v54, %v1680_v53  ;;  %v1060_v3 = vadd.f32 %v1713_v60, %v1681_v59  ;;  %v1682_v24 = vsel %vm829_vm6, 1.0, %v3167_v1  ;;  %vm830_vm12 = vcmp.eq.s32.totalorder %v2236_v23, %v2307_v49 }
 0x16f   :  { %v1061_v27 = vadd.f32 %v1714_v25, %v1682_v24  ;;  %vm1102_vm0 = vcmp.eq.s32.totalorder %v2236_v23, %v2325_v55  ;;  %vm831_vm1 = vcmp.eq.s32.totalorder %v2227_v22, %v2298_v46  ;;  %vm967_vm2 = vcmp.eq.s32.totalorder %v2227_v22, %v2301_v47 }
 0x170   :  { %v1195_v8 = vadd.f32 %v1744_v61, %v1059_v58  ;;  %v1196_v7 = vadd.f32 %v1745_v9, %v1060_v3  ;;  %vm1373_vm3 = vcmp.eq.s32.totalorder %v2236_v23, %v2348_v63  ;;  %vm1374_vm5 = vcmp.eq.s32.totalorder %v2236_v23, %v2354_v12 }
 0x171   :  { %441 = vmatmul.mubr.f32.gmra.mxu1 %v55_v29  ;;  %v1746_v29 = vsel %vm1101_vm10, 1.0, %v3167_v1  ;;  %vm832_vm6 = vcmp.eq.s32.totalorder %v2227_v22, %v2307_v49  ;;  %vm968_vm7 = vcmp.eq.s32.totalorder %v2227_v22, %v2310_v50  ;;  %v1779_v45 = vsel %vm1238_vm4, 1.0, %v3167_v1 }
 0x172   :  { %446 = vmatprep.mubr.f32.mxu1 %v3167_v1  ;;  %v1331_v28 = vadd.f32 %v1776_v26, %v1195_v8  ;;  %vm833_vm8 = vcmp.eq.s32.totalorder %v2218_v21, %v2298_v46  ;;  %vm969_vm9 = vcmp.eq.s32.totalorder %v2218_v21, %v2301_v47  ;;  %v1811_v48 = vsel %vm1374_vm5, 1.0, %v3167_v1 }
 0x173   :  { %vm1103_vm10 = vcmp.eq.s32.totalorder %v2227_v22, %v2315_v51  ;;  %v1685_v53 = vsel %vm832_vm6, 1.0, %v3167_v1  ;;  %v1717_v54 = vsel %vm968_vm7, 1.0, %v3167_v1  ;;  %v1686_v57 = vsel %vm833_vm8, 1.0, %v3167_v1 }
 0x174   :  { %v1718_v58 = vsel %vm969_vm9, 1.0, %v3167_v1  ;;  %v1748_v59 = vsel %vm1103_vm10, 1.0, %v3167_v1  ;;  %v1064_v61 = vadd.f32 %v1717_v54, %v1685_v53  ;;  %vm1240_vm4 = vcmp.eq.s32.totalorder %v2227_v22, %v2339_v62 }
 0x175   :  { %447 = vmatmul.mubr.f32.gmra.mxu1 %v56_v30  ;;  %v1808_v30 = vsel %vm1371_vm11, 1.0, %v3167_v1  ;;  %vm834_vm11 = vcmp.eq.s32.totalorder %v2218_v21, %v2307_v49  ;;  %v1065_v9 = vadd.f32 %v1718_v58, %v1686_v57  ;;  %vm1241_vm5 = vcmp.eq.s32.totalorder %v2218_v21, %v2330_v56 }
 0x176   :  { %452 = vmatprep.mubr.f32.mxu1 %v3167_v1  ;;  %v1687_v3 = vsel %vm834_vm11, 1.0, %v3167_v1  ;;  %vm1375_vm6 = vcmp.eq.s32.totalorder %v2227_v22, %v2348_v63  ;;  %vm1376_vm7 = vcmp.eq.s32.totalorder %v2227_v22, %v2354_v12  ;;  %vm1242_vm8 = vcmp.eq.s32.totalorder %v2218_v21, %v2339_v62 }
 0x177   :  { %vm1243_vm9 = vcmp.eq.s32.totalorder %v2209_v20, %v2330_v56  ;;  %vm1377_vm10 = vcmp.eq.s32.totalorder %v2218_v21, %v2348_v63  ;;  %vm836_vm11 = vcmp.eq.s32.totalorder %v2209_v20, %v2307_v49 }
 0x178   :  { %v1784_v53 = vsel %vm1243_vm9, 1.0, %v3167_v1  ;;  %v1814_v54 = vsel %vm1377_vm10, 1.0, %v3167_v1  ;;  %v1689_v57 = vsel %vm836_vm11, 1.0, %v3167_v1  ;;  %vm840_vm9 = vcmp.eq.s32.totalorder %v2191_v18, %v2307_v49 }
 0x179   :  { %453 = vmatmul.mubr.f32.gmra.mxu1 %v57_v31  ;;  %v1683_v31 = vsel %vm830_vm12, 1.0, %v3167_v1  ;;  %vm970_vm12 = vcmp.eq.s32.totalorder %v2218_v21, %v2310_v50  ;;  %vm976_vm10 = vcmp.eq.s32.totalorder %v2191_v18, %v2310_v50  ;;  %vm1110_vm11 = vcmp.eq.s32.totalorder %v2200_v19, %v2325_v55 }
 0x17a   :  { %458 = vmatprep.mubr.f32.mxu1 %v3167_v1  ;;  %v1719_v8 = vsel %vm970_vm12, 1.0, %v3167_v1  ;;  %vm972_vm12 = vcmp.eq.s32.totalorder %v2209_v20, %v2310_v50 }
 0x17d   :  { %459 = vmatmul.mubr.f32.gmra.mxu1 %v58_v32  ;;  %v1715_v32 = vsel %vm966_vm13, 1.0, %v3167_v1  ;;  %vm835_vm13 = vcmp.eq.s32.totalorder %v2209_v20, %v2298_v46 }
 0x17e   :  { %464 = vmatprep.mubr.f32.mxu1 %v3167_v1  ;;  %v1688_v24 = vsel %vm835_vm13, 1.0, %v3167_v1  ;;  %vm1378_vm13 = vcmp.eq.s32.totalorder %v2218_v21, %v2354_v12 }
 0x181   :  { %465 = vmatmul.mubr.f32.gmra.mxu1 %v59_v33  ;;  %v1332_v33 = vadd.f32 %v1777_v6, %v1196_v7 }
 0x182   :  { %470 = vmatprep.mubr.f32.mxu1 %v3167_v1 }
 0x185   :  { %471 = vmatmul.mubr.f32.gmra.mxu1 %v60_v34  ;;  %v1809_v34 = vsel %vm1372_vm14, 1.0, %v3167_v1  ;;  %vm971_vm14 = vcmp.eq.s32.totalorder %v2209_v20, %v2301_v47 }
 0x186   :  { %476 = vmatprep.mubr.f32.mxu1 %v3167_v1  ;;  %v1720_v25 = vsel %vm971_vm14, 1.0, %v3167_v1  ;;  %vm1379_vm14 = vcmp.eq.s32.totalorder %v2209_v20, %v2348_v63 }
 0x189   :  { %477 = vmatmul.mubr.f32.gmra.mxu1 %v61_v35  ;;  %v1197_v35 = vadd.f32 %v1746_v29, %v1061_v27 }
 0x18a   :  { %482 = vmatprep.mubr.f32.mxu1 %v3167_v1 }
 0x18d   :  { %483 = vmatmul.mubr.f32.gmra.mxu1 %v62_v36  ;;  %v2385_v36 = vadd.f32 %v1808_v30, %v1331_v28  ;;  %v1066_v28 = vadd.f32 %v1719_v8, %v1687_v3  ;;  %v1067_v30 = vadd.f32 %v1720_v25, %v1688_v24  ;;  %v1815_v3 = vsel %vm1378_vm13, 1.0, %v3167_v1 }
 0x18e   :  { %488 = vmatprep.mubr.f32.mxu1 %v3167_v1  ;;  %vm1111_vm13 = vcmp.eq.s32.totalorder %v2191_v18, %v2315_v51 }
 0x191   :  { %489 = vmatmul.mubr.f32.gmra.mxu1 %v63_v37  ;;  %v1778_v37 = vsel %vm1237_vm15, 1.0, %v3167_v1  ;;  %vm1239_vm15 = vcmp.eq.s32.totalorder %v2227_v22, %v2330_v56 }
 0x192   :  { %494 = vmatprep.mubr.f32.mxu1 %v3167_v1  ;;  %v2404_v44 = vadd.f32 %v1778_v37, %v1197_v35  ;;  %v1780_v27 = vsel %vm1239_vm15, 1.0, %v3167_v1  ;;  %v1781_v35 = vsel %vm1240_vm4, 1.0, %v3167_v1  ;;  %v1782_v37 = vsel %vm1241_vm5, 1.0, %v3167_v1 }
 0x193   :  { %vm1108_vm15 = vcmp.eq.s32.totalorder %v2209_v20, %v2325_v55  ;;  %vm974_vm4 = vcmp.eq.s32.totalorder %v2200_v19, %v2310_v50  ;;  %vm1380_vm5 = vcmp.eq.s32.totalorder %v2209_v20, %v2354_v12 }
 0x195   :  { %495 = vmatmul.mubr.f32.gmra.mxu1 %v64_v38  ;;  %v1062_v38 = vadd.f32 %v1715_v32, %v1683_v31 }
 0x196   :  { %500 = vmatprep.mubr.f32.mxu1 %v3167_v1 }
 0x199   :  { %501 = vmatmul.mubr.f32.gmra.mxu1 %v65_v39  ;;  %v1747_v39 = vsel %vm1102_vm0, 1.0, %v3167_v1  ;;  %vm1104_vm0 = vcmp.eq.s32.totalorder %v2227_v22, %v2325_v55  ;;  %v1721_v22 = vsel %vm972_vm12, 1.0, %v3167_v1  ;;  %vm1245_vm12 = vcmp.eq.s32.totalorder %v2200_v19, %v2330_v56 }
 0x19a   :  { %506 = vmatprep.mubr.f32.mxu1 %v3167_v1  ;;  %v1198_v23 = vadd.f32 %v1747_v39, %v1062_v38  ;;  %v1749_v7 = vsel %vm1104_vm0, 1.0, %v3167_v1  ;;  %v1812_v39 = vsel %vm1375_vm6, 1.0, %v3167_v1  ;;  %vm1244_vm0 = vcmp.eq.s32.totalorder %v2209_v20, %v2339_v62 }
 0x19b   :  { %v1200_v31 = vadd.f32 %v1749_v7, %v1064_v61  ;;  %v1785_v25 = vsel %vm1244_vm0, 1.0, %v3167_v1  ;;  %vm1109_vm6 = vcmp.eq.s32.totalorder %v2200_v19, %v2315_v51  ;;  %vm1381_vm0 = vcmp.eq.s32.totalorder %v2200_v19, %v2348_v63 }
 0x19c   :  { %v1334_v60 = vadd.f32 %v1779_v45, %v1198_v23 }
 0x19d   :  { %507 = vmatmul.mubr.f32.gmra.mxu1 %v66_v40  ;;  %v1684_v40 = vsel %vm831_vm1, 1.0, %v3167_v1  ;;  %vm1105_vm1 = vcmp.eq.s32.totalorder %v2218_v21, %v2315_v51  ;;  %v1336_v23 = vadd.f32 %v1781_v35, %v1200_v31  ;;  %v1693_v35 = vsel %vm840_vm9, 1.0, %v3167_v1 }
 0x19e   :  { %512 = vmatprep.mubr.f32.mxu1 %v3167_v1  ;;  %v1750_v6 = vsel %vm1105_vm1, 1.0, %v3167_v1  ;;  %vm837_vm1 = vcmp.eq.s32.totalorder %v2200_v19, %v2298_v46  ;;  %vm1383_vm9 = vcmp.eq.s32.totalorder %v2191_v18, %v2348_v63 }
 0x19f   :  { %v1201_v32 = vadd.f32 %v1750_v6, %v1065_v9  ;;  %v1690_v7 = vsel %vm837_vm1, 1.0, %v3167_v1  ;;  %vm1112_vm1 = vcmp.eq.s32.totalorder %v2191_v18, %v2325_v55 }
 0x1a1   :  { %513 = vmatmul.mubr.f32.gmra.mxu1 %v67_v41  ;;  %v1716_v41 = vsel %vm967_vm2, 1.0, %v3167_v1  ;;  %vm1106_vm2 = vcmp.eq.s32.totalorder %v2218_v21, %v2325_v55 }
 0x1a2   :  { %518 = vmatprep.mubr.f32.mxu1 %v3167_v1  ;;  %v1063_v52 = vadd.f32 %v1716_v41, %v1684_v40  ;;  %v1751_v29 = vsel %vm1106_vm2, 1.0, %v3167_v1  ;;  %v1813_v40 = vsel %vm1376_vm7, 1.0, %v3167_v1  ;;  %v1783_v41 = vsel %vm1242_vm8, 1.0, %v3167_v1 }
 0x1a3   :  { %v1202_v38 = vadd.f32 %v1751_v29, %v1066_v28  ;;  %v2496_v9 = vadd.f32 %v1813_v40, %v1336_v23  ;;  %vm973_vm2 = vcmp.eq.s32.totalorder %v2200_v19, %v2301_v47  ;;  %vm839_vm7 = vcmp.eq.s32.totalorder %v2191_v18, %v2298_v46 }
 0x1a4   :  { %v1199_v26 = vadd.f32 %v1748_v59, %v1063_v52  ;;  %v1337_v52 = vadd.f32 %v1782_v37, %v1201_v32  ;;  %v2487_v59 = vadd.f32 %v1811_v48, %v1334_v60  ;;  %v1753_v60 = vsel %vm1108_vm15, 1.0, %v3167_v1 }
 0x1a5   :  { %519 = vmatmul.mubr.f32.gmra.mxu1 %v68_v42  ;;  %v2395_v42 = vadd.f32 %v1809_v34, %v1332_v33  ;;  %v1338_v21 = vadd.f32 %v1783_v41, %v1202_v38  ;;  %vm975_vm8 = vcmp.eq.s32.totalorder %v2191_v18, %v2301_v47  ;;  %v1722_v6 = vsel %vm973_vm2, 1.0, %v3167_v1 }
 0x1a6   :  { %524 = vmatprep.mubr.f32.mxu1 %v3167_v1  ;;  %v1335_v34 = vadd.f32 %v1780_v27, %v1199_v26  ;;  %v2498_v24 = vadd.f32 %v1814_v54, %v1337_v52  ;;  %v1723_v28 = vsel %vm974_vm4, 1.0, %v3167_v1  ;;  %v1817_v29 = vsel %vm1380_vm5, 1.0, %v3167_v1 }
 0x1a7   :  { %v2509_v48 = vadd.f32 %v1815_v3, %v1338_v21  ;;  %v1692_v31 = vsel %vm839_vm7, 1.0, %v3167_v1  ;;  %v1724_v32 = vsel %vm975_vm8, 1.0, %v3167_v1  ;;  %v1725_v37 = vsel %vm976_vm10, 1.0, %v3167_v1 }
 0x1a8   :  { %v2489_v61 = vadd.f32 %v1812_v39, %v1335_v34  ;;  %vm977_vm15 = vcmp.eq.s32.totalorder %v2182_v17, %v2301_v47  ;;  %v1755_v38 = vsel %vm1110_vm11, 1.0, %v3167_v1  ;;  %v1071_v39 = vadd.f32 %v1724_v32, %v1692_v31 }
 0x1a9   :  { %525 = vmatmul.mubr.f32.gmra.mxu1 %v69_v43  ;;  %v2398_v43 = vsel %vm1373_vm3, 1.0, %v3167_v1  ;;  %vm1107_vm3 = vcmp.eq.s32.totalorder %v2209_v20, %v2315_v51  ;;  %3179 = vst [vmem:[#allocation16_spill] sm:$0xff] %v2509_v48  ;;  %v1786_v41 = vsel %vm1245_vm12, 1.0, %v3167_v1  ;;  %vm1246_vm2 = vcmp.eq.s32.totalorder %v2200_v19, %v2339_v62 }
 0x1aa   :  { %v1752_v33 = vsel %vm1107_vm3, 1.0, %v3167_v1  ;;  %v2485_v58 = vadd.f32 %v2398_v43, %v2404_v44  ;;  %v1816_v43 = vsel %vm1379_vm14, 1.0, %v3167_v1  ;;  %v1068_v44 = vadd.f32 %v1721_v22, %v1689_v57 }
 0x1ab   :  { %v1203_v45 = vadd.f32 %v1752_v33, %v1067_v30  ;;  %vm838_vm3 = vcmp.eq.s32.totalorder %v2200_v19, %v2307_v49  ;;  %v1754_v30 = vsel %vm1109_vm6, 1.0, %v3167_v1  ;;  %v1069_v33 = vadd.f32 %v1722_v6, %v1690_v7 }
 0x1ac   :  { %v1691_v27 = vsel %vm838_vm3, 1.0, %v3167_v1  ;;  %v1204_v20 = vadd.f32 %v1753_v60, %v1068_v44  ;;  %vm841_vm14 = vcmp.eq.s32.totalorder %v2182_v17, %v2298_v46  ;;  %vm1247_vm3 = vcmp.eq.s32.totalorder %v2191_v18, %v2330_v56 }
 0x1ad   :  { %v1339_v8 = vadd.f32 %v1784_v53, %v1203_v45  ;;  %v1070_v34 = vadd.f32 %v1723_v28, %v1691_v27  ;;  %v1756_v45 = vsel %vm1111_vm13, 1.0, %v3167_v1  ;;  %v1072_v23 = vadd.f32 %v1725_v37, %v1693_v35 }
 0x1ae   :  { %v1340_v40 = vadd.f32 %v1785_v25, %v1204_v20  ;;  %v1694_v52 = vsel %vm841_vm14, 1.0, %v3167_v1  ;;  %v1726_v53 = vsel %vm977_vm15, 1.0, %v3167_v1  ;;  %v1205_v54 = vadd.f32 %v1754_v30, %v1069_v33 }
 0x1af   :  { %v2515_v26 = vadd.f32 %v1816_v43, %v1339_v8  ;;  %v1206_v57 = vadd.f32 %v1755_v38, %v1070_v34  ;;  %v1757_v22 = vsel %vm1112_vm1, 1.0, %v3167_v1  ;;  %vm1113_vm4 = vcmp.eq.s32.totalorder %v2182_v17, %v2315_v51 }
 0x1b0   :  { %v1818_v21 = vsel %vm1381_vm0, 1.0, %v3167_v1  ;;  %v1787_v3 = vsel %vm1246_vm2, 1.0, %v3167_v1  ;;  %v1207_v8 = vadd.f32 %v1756_v45, %v1071_v39  ;;  %vm1248_vm5 = vcmp.eq.s32.totalorder %v2191_v18, %v2339_v62 }
 0x1b1   :  { %3180 = vst [vmem:[#allocation17_spill] sm:$0xff] %v2515_v26  ;;  %v1788_v43 = vsel %vm1247_vm3, 1.0, %v3167_v1  ;;  %v1073_v44 = vadd.f32 %v1726_v53, %v1694_v52  ;;  %vm842_vm6 = vcmp.eq.s32.totalorder %v2182_v17, %v2307_v49  ;;  %vm978_vm7 = vcmp.eq.s32.totalorder %v2182_v17, %v2310_v50 }
 0x1b2   :  { %vm1382_vm8 = vcmp.eq.s32.totalorder %v2200_v19, %v2354_v12  ;;  %v1208_v60 = vadd.f32 %v1757_v22, %v1072_v23  ;;  %v1758_v25 = vsel %vm1113_vm4, 1.0, %v3167_v1  ;;  %v1341_v7 = vadd.f32 %v1786_v41, %v1205_v54 }
 0x1b3   :  { %v1342_v6 = vadd.f32 %v1787_v3, %v1206_v57  ;;  %v1789_v27 = vsel %vm1248_vm5, 1.0, %v3167_v1  ;;  %vm1249_vm10 = vcmp.eq.s32.totalorder %v2182_v17, %v2330_v56  ;;  %v1343_v28 = vadd.f32 %v1788_v43, %v1207_v8 }
 0x1b4   :  { %vm1384_vm11 = vcmp.eq.s32.totalorder %v2191_v18, %v2354_v12  ;;  %v1695_v20 = vsel %vm842_vm6, 1.0, %v3167_v1  ;;  %v1727_v19 = vsel %vm978_vm7, 1.0, %v3167_v1  ;;  %v1819_v30 = vsel %vm1382_vm8, 1.0, %v3167_v1 }
 0x1b5   :  { %v1820_v31 = vsel %vm1383_vm9, 1.0, %v3167_v1  ;;  %v1209_v32 = vadd.f32 %v1758_v25, %v1073_v44  ;;  %vm1114_vm12 = vcmp.eq.s32.totalorder %v2182_v17, %v2325_v55  ;;  %v2591_v33 = vadd.f32 %v1817_v29, %v1340_v40 }
 0x1b6   :  { %v1344_v34 = vadd.f32 %v1789_v27, %v1208_v60  ;;  %v1790_v35 = vsel %vm1249_vm10, 1.0, %v3167_v1  ;;  %vm1385_vm13 = vcmp.eq.s32.totalorder %v2182_v17, %v2348_v63  ;;  %v2596_v18 = vadd.f32 %v1818_v21, %v1341_v7 }
 0x1b7   :  { %3181 = vst [vmem:[#allocation18_spill] sm:$0xff] %v2591_v33  ;;  %v1821_v37 = vsel %vm1384_vm11, 1.0, %v3167_v1  ;;  %v1074_v38 = vadd.f32 %v1727_v19, %v1695_v20  ;;  %vm1250_vm14 = vcmp.eq.s32.totalorder %v2182_v17, %v2339_v62  ;;  %v2601_v39 = vadd.f32 %v1819_v30, %v1342_v6 }
 0x1b8   :  { %3182 = vst [vmem:[#allocation19_spill] sm:$0xff] %v2596_v18  ;;  %v2603_v41 = vadd.f32 %v1820_v31, %v1343_v28  ;;  %v1759_v29 = vsel %vm1114_vm12, 1.0, %v3167_v1  ;;  %vm1386_vm15 = vcmp.eq.s32.totalorder %v2182_v17, %v2354_v12  ;;  %v1345_v40 = vadd.f32 %v1790_v35, %v1209_v32 }
 0x1b9   :  { %3183 = vst [vmem:[#allocation20_spill] sm:$0xff] %v2601_v39  ;;  %v1822_v45 = vsel %vm1385_vm13, 1.0, %v3167_v1  ;;  %vm843_vm0 = vcmp.eq.s32.totalorder %v2173_v16, %v2298_v46  ;;  %vm979_vm1 = vcmp.eq.s32.totalorder %v2173_v16, %v2301_v47  ;;  %v2613_v23 = vadd.f32 %v1821_v37, %v1344_v34 }
 0x1ba   :  { %3184 = vst [vmem:[#allocation21_spill] sm:$0xff] %v2603_v41  ;;  %v1791_v52 = vsel %vm1250_vm14, 1.0, %v3167_v1  ;;  %vm844_vm2 = vcmp.eq.s32.totalorder %v2173_v16, %v2307_v49  ;;  %vm980_vm3 = vcmp.eq.s32.totalorder %v2173_v16, %v2310_v50  ;;  %v1210_v17 = vadd.f32 %v1759_v29, %v1074_v38 }
 0x1bb   :  { %3185 = vst [vmem:[#allocation22_spill] sm:$0xff] %v2613_v23  ;;  %v2621_v53 = vsel %vm1386_vm15, 1.0, %v3167_v1  ;;  %vm845_vm4 = vcmp.eq.s32.totalorder %v2164_v15, %v2298_v46  ;;  %vm981_vm5 = vcmp.eq.s32.totalorder %v2164_v15, %v2301_v47  ;;  %v1696_v54 = vsel %vm843_vm0, 1.0, %v3167_v1 }
 0x1bc   :  { %v1728_v57 = vsel %vm979_vm1, 1.0, %v3167_v1  ;;  %vm846_vm6 = vcmp.eq.s32.totalorder %v2164_v15, %v2307_v49  ;;  %vm982_vm7 = vcmp.eq.s32.totalorder %v2164_v15, %v2310_v50  ;;  %v2633_v22 = vadd.f32 %v1822_v45, %v1345_v40 }
 0x1bd   :  { %vm1115_vm8 = vcmp.eq.s32.totalorder %v2173_v16, %v2315_v51  ;;  %v1697_v21 = vsel %vm844_vm2, 1.0, %v3167_v1  ;;  %v1729_v3 = vsel %vm980_vm3, 1.0, %v3167_v1  ;;  %v1698_v8 = vsel %vm845_vm4, 1.0, %v3167_v1 }
 0x1be   :  { %3186 = vst [vmem:[#allocation23_spill] sm:$0xff] %v2633_v22  ;;  %v1730_v43 = vsel %vm981_vm5, 1.0, %v3167_v1  ;;  %vm847_vm9 = vcmp.eq.s32.totalorder %v2155_v14, %v2298_v46  ;;  %vm983_vm10 = vcmp.eq.s32.totalorder %v2155_v14, %v2301_v47  ;;  %vm1116_vm11 = vcmp.eq.s32.totalorder %v2173_v16, %v2325_v55 }
 0x1bf   :  { %vm1117_vm12 = vcmp.eq.s32.totalorder %v2164_v15, %v2315_v51  ;;  %v1699_v44 = vsel %vm846_vm6, 1.0, %v3167_v1  ;;  %v1731_v60 = vsel %vm982_vm7, 1.0, %v3167_v1  ;;  %v1075_v25 = vadd.f32 %v1728_v57, %v1696_v54 }
 0x1c0   :  { %v1760_v7 = vsel %vm1115_vm8, 1.0, %v3167_v1  ;;  %vm1251_vm13 = vcmp.eq.s32.totalorder %v2173_v16, %v2330_v56  ;;  %vm1118_vm14 = vcmp.eq.s32.totalorder %v2164_v15, %v2325_v55  ;;  %v1076_v6 = vadd.f32 %v1729_v3, %v1697_v21 }
 0x1c1   :  { %v1077_v27 = vadd.f32 %v1730_v43, %v1698_v8  ;;  %v1700_v28 = vsel %vm847_vm9, 1.0, %v3167_v1  ;;  %v1732_v20 = vsel %vm983_vm10, 1.0, %v3167_v1  ;;  %v1761_v19 = vsel %vm1116_vm11, 1.0, %v3167_v1 }
 0x1c2   :  { %v1762_v30 = vsel %vm1117_vm12, 1.0, %v3167_v1  ;;  %v1078_v31 = vadd.f32 %v1731_v60, %v1699_v44  ;;  %vm1119_vm15 = vcmp.eq.s32.totalorder %v2155_v14, %v2315_v51  ;;  %v1346_v32 = vadd.f32 %v1791_v52, %v1210_v17 }
 0x1c3   :  { %vm1252_vm0 = vcmp.eq.s32.totalorder %v2173_v16, %v2339_v62  ;;  %vm1253_vm1 = vcmp.eq.s32.totalorder %v2164_v15, %v2330_v56  ;;  %v1763_v34 = vsel %vm1118_vm14, 1.0, %v3167_v1  ;;  %v1792_v35 = vsel %vm1251_vm13, 1.0, %v3167_v1 }
 0x1c4   :  { %vm1387_vm2 = vcmp.eq.s32.totalorder %v2173_v16, %v2348_v63  ;;  %vm1254_vm3 = vcmp.eq.s32.totalorder %v2164_v15, %v2339_v62  ;;  %v1079_v37 = vadd.f32 %v1732_v20, %v1700_v28  ;;  %v1211_v38 = vadd.f32 %v1760_v7, %v1075_v25 }
 0x1c5   :  { %v1212_v29 = vadd.f32 %v1761_v19, %v1076_v6  ;;  %v1213_v40 = vadd.f32 %v1762_v30, %v1077_v27  ;;  %v1764_v45 = vsel %vm1119_vm15, 1.0, %v3167_v1  ;;  %v1793_v52 = vsel %vm1252_vm0, 1.0, %v3167_v1 }
 0x1c6   :  { %v1794_v17 = vsel %vm1253_vm1, 1.0, %v3167_v1  ;;  %v1214_v54 = vadd.f32 %v1763_v34, %v1078_v31  ;;  %vm1255_vm4 = vcmp.eq.s32.totalorder %v2155_v14, %v2330_v56  ;;  %v1824_v57 = vsel %vm1387_vm2, 1.0, %v3167_v1 }
 0x1c7   :  { %v1795_v21 = vsel %vm1254_vm3, 1.0, %v3167_v1  ;;  %vm848_vm5 = vcmp.eq.s32.totalorder %v2155_v14, %v2307_v49  ;;  %vm984_vm6 = vcmp.eq.s32.totalorder %v2155_v14, %v2310_v50  ;;  %vm1388_vm7 = vcmp.eq.s32.totalorder %v2173_v16, %v2354_v12 }
 0x1c8   :  { %vm1389_vm8 = vcmp.eq.s32.totalorder %v2164_v15, %v2348_v63  ;;  %vm1390_vm9 = vcmp.eq.s32.totalorder %v2164_v15, %v2354_v12  ;;  %v1215_v3 = vadd.f32 %v1764_v45, %v1079_v37  ;;  %v1347_v8 = vadd.f32 %v1792_v35, %v1211_v38 }
 0x1c9   :  { %v1348_v43 = vadd.f32 %v1793_v52, %v1212_v29  ;;  %v1349_v44 = vadd.f32 %v1794_v17, %v1213_v40  ;;  %v1796_v60 = vsel %vm1255_vm4, 1.0, %v3167_v1  ;;  %v1350_v25 = vadd.f32 %v1795_v21, %v1214_v54 }
 0x1ca   :  { %vm1391_vm10 = vcmp.eq.s32.totalorder %v2155_v14, %v2348_v63  ;;  %v1701_v7 = vsel %vm848_vm5, 1.0, %v3167_v1  ;;  %v1733_v16 = vsel %vm984_vm6, 1.0, %v3167_v1  ;;  %v1825_v6 = vsel %vm1388_vm7, 1.0, %v3167_v1 }
 0x1cb   :  { %v1826_v27 = vsel %vm1389_vm8, 1.0, %v3167_v1  ;;  %v1827_v15 = vsel %vm1390_vm9, 1.0, %v3167_v1  ;;  %vm1120_vm11 = vcmp.eq.s32.totalorder %v2155_v14, %v2325_v55  ;;  %v2700_v28 = vadd.f32 %v2621_v53, %v1346_v32 }
 0x1cc   :  { %v1351_v20 = vadd.f32 %v1796_v60, %v1215_v3  ;;  %vm849_vm12 = vcmp.eq.s32.totalorder %v2146_v13, %v2298_v46  ;;  %vm985_vm13 = vcmp.eq.s32.totalorder %v2146_v13, %v2301_v47  ;;  %v2706_v19 = vadd.f32 %v1824_v57, %v1347_v8 }
 0x1cd   :  { %3187 = vst [vmem:[#allocation24_spill] sm:$0xff] %v2700_v28  ;;  %v1828_v30 = vsel %vm1391_vm10, 1.0, %v3167_v1  ;;  %v1080_v31 = vadd.f32 %v1733_v16, %v1701_v7  ;;  %vm1256_vm14 = vcmp.eq.s32.totalorder %v2155_v14, %v2339_v62  ;;  %v2711_v34 = vadd.f32 %v1825_v6, %v1348_v43 }
 0x1ce   :  { %3188 = vst [vmem:[#allocation25_spill] sm:$0xff] %v2706_v19  ;;  %v2713_v35 = vadd.f32 %v1826_v27, %v1349_v44  ;;  %v2715_v53 = vadd.f32 %v1827_v15, %v1350_v25  ;;  %v1765_v32 = vsel %vm1120_vm11, 1.0, %v3167_v1  ;;  %vm1392_vm15 = vcmp.eq.s32.totalorder %v2155_v14, %v2354_v12 }
 0x1cf   :  { %3189 = vst [vmem:[#allocation26_spill] sm:$0xff] %v2711_v34  ;;  %v1702_v37 = vsel %vm849_vm12, 1.0, %v3167_v1  ;;  %v1734_v38 = vsel %vm985_vm13, 1.0, %v3167_v1  ;;  %vm1121_vm0 = vcmp.eq.s32.totalorder %v2146_v13, %v2315_v51  ;;  %v2726_v40 = vadd.f32 %v1828_v30, %v1351_v20 }
 0x1d0   :  { %3190 = vst [vmem:[#allocation27_spill] sm:$0xff] %v2713_v35  ;;  %3191 = vst [vmem:[#allocation28_spill] sm:$0xff] %v2715_v53  ;;  %v1797_v45 = vsel %vm1256_vm14, 1.0, %v3167_v1  ;;  %vm850_vm1 = vcmp.eq.s32.totalorder %v2146_v13, %v2307_v49  ;;  %vm986_vm2 = vcmp.eq.s32.totalorder %v2146_v13, %v2310_v50  ;;  %v1216_v52 = vadd.f32 %v1765_v32, %v1080_v31 }
 0x1d1   :  { %3192 = vst [vmem:[#allocation29_spill] sm:$0xff] %v2726_v40  ;;  %vm1257_vm3 = vcmp.eq.s32.totalorder %v2146_v13, %v2330_v56  ;;  %vm851_vm4 = vcmp.eq.s32.totalorder %v2137_v11, %v2298_v46  ;;  %v2741_v54 = vsel %vm1392_vm15, 1.0, %v3167_v1  ;;  %v1081_v57 = vadd.f32 %v1734_v38, %v1702_v37 }
 0x1d2   :  { %v1766_v21 = vsel %vm1121_vm0, 1.0, %v3167_v1  ;;  %vm987_vm5 = vcmp.eq.s32.totalorder %v2137_v11, %v2301_v47  ;;  %v1703_v43 = vsel %vm850_vm1, 1.0, %v3167_v1  ;;  %v1735_v44 = vsel %vm986_vm2, 1.0, %v3167_v1 }
 0x1d3   :  { %v1798_v25 = vsel %vm1257_vm3, 1.0, %v3167_v1  ;;  %vm1393_vm6 = vcmp.eq.s32.totalorder %v2146_v13, %v2348_v63  ;;  %vm1122_vm7 = vcmp.eq.s32.totalorder %v2146_v13, %v2325_v55  ;;  %v1704_v7 = vsel %vm851_vm4, 1.0, %v3167_v1 }
 0x1d4   :  { %v1736_v15 = vsel %vm987_vm5, 1.0, %v3167_v1  ;;  %v1217_v30 = vadd.f32 %v1766_v21, %v1081_v57  ;;  %v1082_v31 = vadd.f32 %v1735_v44, %v1703_v43  ;;  %vm1258_vm8 = vcmp.eq.s32.totalorder %v2146_v13, %v2339_v62 }
 0x1d5   :  { %vm1123_vm9 = vcmp.eq.s32.totalorder %v2137_v11, %v2315_v51  ;;  %v1767_v38 = vsel %vm1122_vm7, 1.0, %v3167_v1  ;;  %vm852_vm10 = vcmp.eq.s32.totalorder %v2137_v11, %v2307_v49  ;;  %vm988_vm11 = vcmp.eq.s32.totalorder %v2137_v11, %v2310_v50 }
 0x1d6   :  { %v1768_v43 = vsel %vm1123_vm9, 1.0, %v3167_v1  ;;  %vm1259_vm12 = vcmp.eq.s32.totalorder %v2137_v11, %v2330_v56  ;;  %vm1394_vm13 = vcmp.eq.s32.totalorder %v2146_v13, %v2354_v12  ;;  %vm1124_vm14 = vcmp.eq.s32.totalorder %v2137_v11, %v2325_v55 }
 0x1d7   :  { %v1353_v2 = vadd.f32 %v1798_v25, %v1217_v30  ;;  %vm1395_vm15 = vcmp.eq.s32.totalorder %v2137_v11, %v2348_v63  ;;  %vm1260_vm0 = vcmp.eq.s32.totalorder %v2137_v11, %v2339_v62  ;;  %vm853_vm1 = vcmp.eq.s32.totalorder %v2128_v10, %v2298_v46 }
 0x1d8   :  { %vm989_vm2 = vcmp.eq.s32.totalorder %v2128_v10, %v2301_v47  ;;  %v1832_v13 = vsel %vm1395_vm15, 1.0, %v3167_v1  ;;  %vm1396_vm3 = vcmp.eq.s32.totalorder %v2137_v11, %v2354_v12  ;;  %vm1125_vm4 = vcmp.eq.s32.totalorder %v2128_v10, %v2315_v51 }
 0x1d9   :  { %vm1261_vm5 = vcmp.eq.s32.totalorder %v2128_v10, %v2330_v56  ;;  %vm854_vm7 = vcmp.eq.s32.totalorder %v2128_v10, %v2307_v49  ;;  %vm1126_vm9 = vcmp.eq.s32.totalorder %v2128_v10, %v2325_v55  ;;  %vm1263_vm15 = vcmp.eq.s32.totalorder %v2115_v5, %v2330_v56 }
 0x22d   :  { %v2724_v29 = vpop.f32.mrf.mxu1 }
 0x22e   :  { %v563_v14 = vand.u32 2147483647, %v2724_v29 }
 0x22f   :  { %v2738_v17 = vpop.f32.mrf.mxu1 }
 0x230   :  { %v595_v3 = vsub.f32 0.0, %v563_v14  ;;  %v564_v8 = vand.u32 2147483647, %v2738_v17 }
 0x231   :  { %v2749_v60 = vpop.f32.mrf.mxu1 }
 0x232   :  { %v627_v16 = vmul.f32 1.442695, %v595_v3  ;;  %v596_v6 = vsub.f32 0.0, %v564_v8  ;;  %v565_v27 = vand.u32 2147483647, %v2749_v60  ;;  %v1083_v8 = vadd.f32 %v1736_v15, %v1704_v7 }
 0x233   :  { %v2759_v20 = vpop.f32.mrf.mxu1  ;;  %v1799_v7 = vsel %vm1258_vm8, 1.0, %v3167_v1  ;;  %v1705_v15 = vsel %vm852_vm10, 1.0, %v3167_v1  ;;  %vm990_vm8 = vcmp.eq.s32.totalorder %v2128_v10, %v2310_v50  ;;  %vm1262_vm10 = vcmp.eq.s32.totalorder %v2128_v10, %v2339_v62 }
 0x234   :  { %1849 = vpow2.f32 %v627_v16  ;;  %v629_v32 = vmul.f32 1.442695, %v596_v6  ;;  %v597_v37 = vsub.f32 0.0, %v565_v27  ;;  %v566_v14 = vand.u32 2147483647, %v2759_v20 }
 0x235   :  { %v2767_v3 = vpop.f32.mrf.mxu1  ;;  %v1218_v6 = vadd.f32 %v1767_v38, %v1082_v31  ;;  %v1219_v31 = vadd.f32 %v1768_v43, %v1083_v8  ;;  %v1830_v8 = vsel %vm1393_vm6, 1.0, %v3167_v1  ;;  %v1831_v43 = vsel %vm1394_vm13, 1.0, %v3167_v1 }
 0x236   :  { %1851 = vpow2.f32 %v629_v32  ;;  %v631_v57 = vmul.f32 1.442695, %v597_v37  ;;  %v567_v21 = vand.u32 2147483647, %v2767_v3  ;;  %v598_v44 = vsub.f32 0.0, %v566_v14 }
 0x237   :  { %v2775_v16 = vpop.f32.mrf.mxu1  ;;  %v1737_v32 = vsel %vm988_vm11, 1.0, %v3167_v1  ;;  %v1352_v14 = vadd.f32 %v1797_v45, %v1216_v52  ;;  %v1354_v53 = vadd.f32 %v1799_v7, %v1218_v6  ;;  %v1769_v45 = vsel %vm1124_vm14, 1.0, %v3167_v1 }
 0x238   :  { %1853 = vpow2.f32 %v631_v57  ;;  %v599_v27 = vsub.f32 0.0, %v567_v21  ;;  %v633_v37 = vmul.f32 1.442695, %v598_v44  ;;  %v1800_v57 = vsel %vm1259_vm12, 1.0, %v3167_v1 }
 0x239   :  { %v2785_v0 = vpop.f32.mrf.mxu1  ;;  %v1084_v44 = vadd.f32 %v1737_v32, %v1705_v15  ;;  %v1355_v25 = vadd.f32 %v1800_v57, %v1219_v31  ;;  %v568_v30 = vand.u32 2147483647, %v2775_v16  ;;  %v2819_v7 = vadd.f32 %v2741_v54, %v1352_v14 }
 0x23a   :  { %v635_v38 = vmul.f32 1.442695, %v599_v27  ;;  %1855 = vpow2.f32 %v633_v37  ;;  %v2821_v27 = vadd.f32 %v1830_v8, %v1353_v2  ;;  %v2823_v15 = vadd.f32 %v1831_v43, %v1354_v53 }
 0x23b   :  { %v2792_v21 = vpop.f32.mrf.mxu1  ;;  %3193 = vst [vmem:[#allocation30_spill] sm:$0xff] %v2819_v7  ;;  %v1220_v32 = vadd.f32 %v1769_v45, %v1084_v44  ;;  %v1801_v37 = vsel %vm1260_vm0, 1.0, %v3167_v1  ;;  %v1706_v31 = vsel %vm853_vm1, 1.0, %v3167_v1  ;;  %v2832_v40 = vadd.f32 %v1832_v13, %v1355_v25 }
 0x23c   :  { %1857 = vpow2.f32 %v635_v38  ;;  %3194 = vst [vmem:[#allocation31_spill] sm:$0xff] %v2821_v27  ;;  %3195 = vst [vmem:[#allocation32_spill] sm:$0xff] %v2823_v15  ;;  %v1738_v38 = vsel %vm989_vm2, 1.0, %v3167_v1  ;;  %v1833_v2 = vsel %vm1396_vm3, 1.0, %v3167_v1  ;;  %v1770_v53 = vsel %vm1125_vm4, 1.0, %v3167_v1 }
 0x23d   :  { %v2802_v52 = vpop.f32.mrf.mxu1  ;;  %3196 = vst [vmem:[#allocation33_spill] sm:$0xff] %v2832_v40  ;;  %vm1397_vm6 = vcmp.eq.s32.totalorder %v2128_v10, %v2348_v63  ;;  %v600_v14 = vsub.f32 0.0, %v568_v30  ;;  %v569_v8 = vand.u32 2147483647, %v2785_v0  ;;  %v1356_v45 = vadd.f32 %v1801_v37, %v1220_v32 }
 0x23e   :  { %v1085_v25 = vadd.f32 %v1738_v38, %v1706_v31  ;;  %v1802_v13 = vsel %vm1261_vm5, 1.0, %v3167_v1  ;;  %v1834_v15 = vsel %vm1397_vm6, 1.0, %v3167_v1  ;;  %v1707_v27 = vsel %vm854_vm7, 1.0, %v3167_v1 }
 0x23f   :  { %v2816_v6 = vpop.f32.mrf.mxu1  ;;  %v1739_v35 = vsel %vm990_vm8, 1.0, %v3167_v1  ;;  %v637_v37 = vmul.f32 1.442695, %v600_v14  ;;  %vm855_vm11 = vcmp.eq.s32.totalorder %v2115_v5, %v2298_v46  ;;  %v601_v31 = vsub.f32 0.0, %v569_v8 }
 0x240   :  { %v571_v38 = vand.u32 2147483647, %v2802_v52  ;;  %vm991_vm12 = vcmp.eq.s32.totalorder %v2115_v5, %v2301_v47  ;;  %v1221_v19 = vadd.f32 %v1770_v53, %v1085_v25  ;;  %v572_v28 = vand.u32 2147483647, %v2816_v6 }
 0x241   :  { %v1850_v11 = vpop.eup %1849  ;;  %v2830_v57 = vpop.f32.mrf.mxu1  ;;  %v3198_v8 = vmov 0.0   ;;  %vm1127_vm13 = vcmp.eq.s32.totalorder %v2115_v5, %v2315_v51  ;;  %vm1398_vm14 = vcmp.eq.s32.totalorder %v2128_v10, %v2354_v12  ;;  %vm1399_vm0 = vcmp.eq.s32.totalorder %v2115_v5, %v2348_v63 }
 0x242   :  { %v691_v54 = vadd.f32 1.0, %v1850_v11  ;;  %v570_v11 = vand.u32 2147483647, %v2792_v21  ;;  %v603_v53 = vsub.f32 0.0, %v571_v38  ;;  %v604_v39 = vsub.f32 0.0, %v572_v28 }
 0x243   :  { %v1852_v44 = vpop.eup %1851  ;;  %v2843_v43 = vpop.f32.mrf.mxu1  ;;  %v1835_v10 = vsel %vm1398_vm14, 1.0, %v3198_v8  ;;  %v1804_v56 = vsel %vm1263_vm15, 1.0, %v3198_v8  ;;  %v1836_v48 = vsel %vm1399_vm0, 1.0, %v3198_v8  ;;  %vm856_vm1 = vcmp.eq.s32.totalorder %v2115_v5, %v2307_v49 }
 0x244   :  { %1859 = vlog2.f32 %v691_v54  ;;  %v692_v30 = vadd.f32 1.0, %v1852_v44  ;;  %v2864_v44 = vadd.f32 %v1833_v2, %v1356_v45  ;;  %v602_v34 = vsub.f32 0.0, %v570_v11 }
 0x245   :  { %v1854_v7 = vpop.eup %1853  ;;  %v2851_v40 = vpop.f32.mrf.mxu1  ;;  %v1771_v2 = vsel %vm1126_vm9, 1.0, %v3198_v8  ;;  %v1708_v45 = vsel %vm855_vm11, 1.0, %v3198_v8  ;;  %v574_v25 = vand.u32 2147483647, %v2843_v43  ;;  %v643_v28 = vmul.f32 1.442695, %v603_v53 }
 0x246   :  { %1861 = vlog2.f32 %v692_v30  ;;  %v693_v32 = vadd.f32 1.0, %v1854_v7  ;;  %3197 = vst [vmem:[#allocation34_spill] sm:$0xff] %v2864_v44  ;;  %v1086_v30 = vadd.f32 %v1739_v35, %v1707_v27  ;;  %v573_v35 = vand.u32 2147483647, %v2830_v57 }
 0x247   :  { %v2862_v54 = vpop.f32.mrf.mxu1  ;;  %v1856_v1 = vpop.eup %1855  ;;  %v639_v27 = vmul.f32 1.442695, %v601_v31  ;;  %v531_v44 = vmin.f32 %v2724_v29, 0.0  ;;  %v641_v23 = vmul.f32 1.442695, %v602_v34  ;;  %v532_v31 = vmin.f32 %v2738_v17, 0.0 }
 0x248   :  { %1863 = vlog2.f32 %v693_v32  ;;  %v694_v14 = vadd.f32 1.0, %v1856_v1  ;;  %v1740_v1 = vsel %vm991_vm12, 1.0, %v3198_v8  ;;  %v1222_v41 = vadd.f32 %v1771_v2, %v1086_v30 }
 0x249   :  { %v1858_v7 = vpop.eup %1857  ;;  %v2869_v22 = vpop.f32.mrf.mxu1  ;;  %1865 = vpow2.f32 %v637_v37  ;;  %v1357_v37 = vadd.f32 %v1802_v13, %v1221_v19  ;;  %v605_v38 = vsub.f32 0.0, %v573_v35  ;;  %v1087_v34 = vadd.f32 %v1740_v1, %v1708_v45 }
 0x24a   :  { %v695_v32 = vadd.f32 1.0, %v1858_v7  ;;  %1867 = vlog2.f32 %v694_v14  ;;  %v1803_v7 = vsel %vm1262_vm10, 1.0, %v3198_v8  ;;  %v606_v29 = vsub.f32 0.0, %v574_v25 }
 0x24b   :  { %v2882_v11 = vpop.f32.mrf.mxu1  ;;  %v575_v19 = vand.u32 2147483647, %v2851_v40  ;;  %v576_v30 = vand.u32 2147483647, %v2862_v54  ;;  %v1358_v14 = vadd.f32 %v1803_v7, %v1222_v41  ;;  %v1772_v2 = vsel %vm1127_vm13, 1.0, %v3198_v8 }
 0x24c   :  { %1869 = vlog2.f32 %v695_v32  ;;  %v645_v17 = vmul.f32 1.442695, %v604_v39  ;;  %v2903_v33 = vadd.f32 %v1834_v15, %v1357_v37  ;;  %v533_v1 = vmin.f32 %v2749_v60, 0.0 }
 0x24d   :  { %v2885_v18 = vpop.f32.mrf.mxu1  ;;  %1871 = vpow2.f32 %v639_v27  ;;  %v647_v27 = vmul.f32 1.442695, %v605_v38  ;;  %v649_v53 = vmul.f32 1.442695, %v606_v29  ;;  %v607_v25 = vsub.f32 0.0, %v575_v19 }
 0x24e   :  { %1873 = vpow2.f32 %v641_v23  ;;  %3199 = vst [vmem:[#allocation35_spill] sm:$0xff] %v2903_v33  ;;  %v534_v23 = vmin.f32 %v2759_v20, 0.0  ;;  %v1223_v7 = vadd.f32 %v1772_v2, %v1087_v34  ;;  %v608_v15 = vsub.f32 0.0, %v576_v30 }
 0x24f   :  { %v2897_v13 = vpop.f32.mrf.mxu1  ;;  %1875 = vpow2.f32 %v643_v28  ;;  %v577_v37 = vand.u32 2147483647, %v2869_v22  ;;  %v2913_v33 = vadd.f32 %v1835_v10, %v1358_v14  ;;  %v578_v60 = vand.u32 2147483647, %v2882_v11 }
 0x250   :  { %1877 = vpow2.f32 %v645_v17  ;;  %v535_v34 = vmin.f32 %v2767_v3, 0.0  ;;  %v651_v30 = vmul.f32 1.442695, %v607_v25  ;;  %v1359_v2 = vadd.f32 %v1804_v56, %v1223_v7 }
 0x251   :  { %v1860_v32 = vpop.eup %1859  ;;  %v2901_v35 = vpop.f32.mrf.mxu1  ;;  %3200 = vst [vmem:[#allocation36_spill] sm:$0xff] %v2913_v33  ;;  %1879 = vpow2.f32 %v647_v27  ;;  %v609_v33 = vsub.f32 0.0, %v577_v37  ;;  %v579_v3 = vand.u32 2147483647, %v2885_v18  ;;  %v580_v56 = vand.u32 2147483647, %v2897_v13 }
 0x252   :  { %v724_v45 = vmul.f32 0.6931472, %v1860_v32  ;;  %1881 = vpow2.f32 %v649_v53  ;;  %v581_v37 = vand.u32 2147483647, %v2901_v35  ;;  %vm992_vm2 = vcmp.eq.s32.totalorder %v2115_v5, %v2310_v50 }
 0x253   :  { %v1862_v41 = vpop.eup %1861  ;;  %v2910_v39 = vpop.f32.mrf.mxu1  ;;  %1883 = vpow2.f32 %v651_v30  ;;  %vm1128_vm3 = vcmp.eq.s32.totalorder %v2115_v5, %v2325_v55  ;;  %vm1264_vm4 = vcmp.eq.s32.totalorder %v2115_v5, %v2339_v62  ;;  %vm1400_vm5 = vcmp.eq.s32.totalorder %v2115_v5, %v2354_v12 }
 0x254   :  { %v726_v26 = vmul.f32 0.6931472, %v1862_v41  ;;  %v787_v38 = vsub.f32 %v531_v44, %v724_v45  ;;  %v653_v41 = vmul.f32 1.442695, %v608_v15  ;;  %vm857_vm6 = vcmp.eq.s32.totalorder %v2112_v4, %v2298_v46 }
 0x255   :  { %v1864_v32 = vpop.eup %1863  ;;  %v2917_v20 = vpop.f32.mrf.mxu1  ;;  %vm993_vm7 = vcmp.eq.s32.totalorder %v2112_v4, %v2301_v47  ;;  %v1710_v5 = vsel %vm857_vm6, 1.0, %v3198_v8  ;;  %vm1129_vm8 = vcmp.eq.s32.totalorder %v2112_v4, %v2315_v51  ;;  %vm858_vm9 = vcmp.eq.s32.totalorder %v2112_v4, %v2307_v49 }
 0x256   :  { %v728_v28 = vmul.f32 0.6931472, %v1864_v32  ;;  %v1866_v29 = vpop.eup %1865  ;;  %v788_v44 = vsub.f32 %v532_v31, %v726_v26  ;;  %v610_v32 = vsub.f32 0.0, %v578_v60  ;;  %v1499_v53 = vmul.f32 %v2385_v36, %v787_v38 }
 0x257   :  { %v2923_v14 = vpop.f32.mrf.mxu1  ;;  %v1868_v17 = vpop.eup %1867  ;;  %v696_v7 = vadd.f32 1.0, %v1866_v29  ;;  %1885 = vpow2.f32 %v653_v41  ;;  %v655_v38 = vmul.f32 1.442695, %v609_v33  ;;  %v582_v33 = vand.u32 2147483647, %v2910_v39 }
 0x258   :  { %v789_v10 = vsub.f32 %v533_v1, %v728_v28  ;;  %v730_v45 = vmul.f32 0.6931472, %v1868_v17  ;;  %v657_v30 = vmul.f32 1.442695, %v610_v32  ;;  %v612_v17 = vsub.f32 0.0, %v580_v56 }
 0x259   :  { %v1870_v63 = vpop.eup %1869  ;;  %v2927_v27 = vpop.f32.mrf.mxu1  ;;  %1887 = vlog2.f32 %v696_v7  ;;  %v2951_v32 = vadd.f32 %v1836_v48, %v1359_v2  ;;  %v1709_v56 = vsel %vm856_vm1, 1.0, %v3198_v8  ;;  %v1741_v48 = vsel %vm992_vm2, 1.0, %v3198_v8 }
 0x25a   :  { %v1501_v25 = vmul.f32 %v2485_v58, %v789_v10  ;;  %v732_v19 = vmul.f32 0.6931472, %v1870_v63  ;;  %v790_v1 = vsub.f32 %v534_v23, %v730_v45  ;;  %v1872_v26 = vpop.eup %1871  ;;  %v1500_v58 = vmul.f32 %v2395_v42, %v788_v44 }
 0x25b   :  { %v2935_v60 = vpop.f32.mrf.mxu1  ;;  %v1874_v36 = vpop.eup %1873  ;;  %v611_v23 = vsub.f32 0.0, %v579_v3  ;;  %1889 = vpow2.f32 %v655_v38  ;;  %v583_v45 = vand.u32 2147483647, %v2917_v20  ;;  %3201 = vst [vmem:[#allocation37_spill] sm:$0xff] %v2951_v32  ;;  %v584_v38 = vand.u32 2147483647, %v2923_v14 }
 0x25c   :  { %v1531_v31 = vadd.f32 %v1501_v25, %v1499_v53  ;;  %v791_v15 = vsub.f32 %v535_v34, %v732_v19  ;;  %v1502_v63 = vmul.f32 %v2487_v59, %v790_v1  ;;  %v697_v34 = vadd.f32 1.0, %v1872_v26  ;;  %v1876_v19 = vpop.eup %1875 }
 0x25d   :  { %v698_v42 = vadd.f32 1.0, %v1874_v36  ;;  %v613_v59 = vsub.f32 0.0, %v581_v37  ;;  %v2948_v44 = vpop.f32.mrf.mxu1  ;;  %v1878_v3 = vpop.eup %1877  ;;  %1891 = vpow2.f32 %v657_v30  ;;  %v661_v25 = vmul.f32 1.442695, %v612_v17 }
 0x25e   :  { %v1503_v28 = vmul.f32 %v2489_v61, %v791_v15  ;;  %v2941_v10 = vadd.f32 %v1502_v63, %v1500_v58  ;;  %v659_v61 = vmul.f32 1.442695, %v611_v23  ;;  %v1880_v1 = vpop.eup %1879  ;;  %1893 = vlog2.f32 %v697_v34 }
 0x25f   :  { %v699_v7 = vadd.f32 1.0, %v1876_v19  ;;  %v585_v26 = vand.u32 2147483647, %v2927_v27  ;;  %v1882_v2 = vpop.eup %1881  ;;  %1895 = vlog2.f32 %v698_v42  ;;  %v614_v15 = vsub.f32 0.0, %v582_v33  ;;  %v2963_v37 = vpop.f32.mrf.mxu1 }
 0x260   :  { %v2945_v41 = vadd.f32 %v1531_v31, %v1503_v28  ;;  %v663_v31 = vmul.f32 1.442695, %v613_v59  ;;  %v700_v36 = vadd.f32 1.0, %v1878_v3  ;;  %1897 = vpow2.f32 %v659_v61  ;;  %v1884_v34 = vpop.eup %1883 }
 0x261   :  { %v615_v58 = vsub.f32 0.0, %v583_v45  ;;  %v701_v63 = vadd.f32 1.0, %v1880_v1  ;;  %1899 = vpow2.f32 %v661_v25  ;;  %v617_v23 = vsub.f32 0.0, %v585_v26  ;;  %v2972_v59 = vpop.f32.mrf.mxu1 }
 0x262   :  { %1901 = vlog2.f32 %v699_v7  ;;  %v702_v28 = vadd.f32 1.0, %v1882_v2  ;;  %v586_v30 = vand.u32 2147483647, %v2935_v60  ;;  %v1088_v17 = vadd.f32 %v1741_v48, %v1709_v56 }
 0x263   :  { %1903 = vpow2.f32 %v663_v31  ;;  %v665_v42 = vmul.f32 1.442695, %v614_v15  ;;  %v1773_v33 = vsel %vm1128_vm3, 1.0, %v3198_v8  ;;  %v667_v3 = vmul.f32 1.442695, %v615_v58  ;;  %v2985_v58 = vpop.f32.mrf.mxu1 }
 0x264   :  { %v1886_v61 = vpop.eup %1885  ;;  %1905 = vlog2.f32 %v700_v36  ;;  %v1805_v25 = vsel %vm1264_vm4, 1.0, %v3198_v8  ;;  %v616_v56 = vsub.f32 0.0, %v584_v38  ;;  %v671_v1 = vmul.f32 1.442695, %v617_v23 }
 0x265   :  { %1907 = vlog2.f32 %v701_v63  ;;  %v587_v7 = vand.u32 2147483647, %v2948_v44  ;;  %v703_v26 = vadd.f32 1.0, %v1884_v34  ;;  %v618_v48 = vsub.f32 0.0, %v586_v30 }
 0x266   :  { %1909 = vlog2.f32 %v702_v28  ;;  %v1224_v2 = vadd.f32 %v1773_v33, %v1088_v17  ;;  %v1888_v31 = vpop.eup %1887  ;;  %v704_v15 = vadd.f32 1.0, %v1886_v61  ;;  %v588_v36 = vand.u32 2147483647, %v2963_v37 }
 0x267   :  { %1911 = vpow2.f32 %v665_v42  ;;  %v619_v45 = vsub.f32 0.0, %v587_v7  ;;  %v669_v38 = vmul.f32 1.442695, %v616_v56  ;;  %v589_v28 = vand.u32 2147483647, %v2972_v59 }
 0x268   :  { %1913 = vpow2.f32 %v667_v3  ;;  %v1890_v63 = vpop.eup %1889  ;;  %v673_v17 = vmul.f32 1.442695, %v618_v48  ;;  %v620_v34 = vsub.f32 0.0, %v588_v36  ;;  %v2993_v42 = vadd.f32 %v1805_v25, %v1224_v2  ;;  %v2995_v3 = vpop.f32.mrf.mxu1 }
 0x269   :  { %1915 = vpow2.f32 %v671_v1  ;;  %v675_v23 = vmul.f32 1.442695, %v619_v45  ;;  %v621_v61 = vsub.f32 0.0, %v589_v28  ;;  %v3001_v56 = vsel %vm1400_vm5, 1.0, %v3198_v8 }
 0x26a   :  { %v1892_v30 = vpop.eup %1891  ;;  %1917 = vlog2.f32 %v703_v26  ;;  %3202 = vst [vmem:[#allocation38_spill] sm:$0xff] %v2993_v42  ;;  %3203 = vst [vmem:[#allocation39_spill] sm:$0xff] %v3001_v56  ;;  %v705_v7 = vadd.f32 1.0, %v1890_v63  ;;  %v677_v36 = vmul.f32 1.442695, %v620_v34  ;;  %v1742_v47 = vsel %vm993_vm7, 1.0, %v3198_v8 }
 0x26b   :  { %v1894_v33 = vpop.eup %1893  ;;  %1919 = vlog2.f32 %v704_v15  ;;  %v706_v48 = vadd.f32 1.0, %v1892_v30  ;;  %v679_v2 = vmul.f32 1.442695, %v621_v61  ;;  %v734_v63 = vmul.f32 0.6931472, %v1888_v31  ;;  %v3016_v30 = vpop.f32.mrf.mxu1 }
 0x26c   :  { %v1896_v45 = vpop.eup %1895  ;;  %1921 = vpow2.f32 %v675_v23  ;;  %v590_v34 = vand.u32 2147483647, %v2985_v58  ;;  %v1089_v19 = vadd.f32 %v1742_v47, %v1710_v5  ;;  %v1774_v31 = vsel %vm1129_vm8, 1.0, %v3198_v8 }
 0x26d   :  { %v1898_v26 = vpop.eup %1897  ;;  %1923 = vpow2.f32 %v669_v38  ;;  %v591_v23 = vand.u32 2147483647, %v2995_v3  ;;  %v736_v29 = vmul.f32 0.6931472, %v1894_v33  ;;  %v3032_v12 = vpop.f32.mrf.mxu1  ;;  %vm994_vm10 = vcmp.eq.s32.totalorder %v2112_v4, %v2310_v50 }
 0x26e   :  { %v1900_v15 = vpop.eup %1899  ;;  %1925 = vpow2.f32 %v673_v17  ;;  %v707_v17 = vadd.f32 1.0, %v1898_v26  ;;  %v3204_v26 = vmin.f32 %v2775_v16, 0.0  ;;  %v3034_v16 = vadd.f32 %v1774_v31, %v1089_v19 }
 0x26f   :  { %v1902_v28 = vpop.eup %1901  ;;  %1927 = vpow2.f32 %v679_v2  ;;  %v708_v1 = vadd.f32 1.0, %v1900_v15  ;;  %v622_v2 = vsub.f32 0.0, %v590_v34  ;;  %v623_v51 = vsub.f32 0.0, %v591_v23 }
 0x270   :  { %v1904_v61 = vpop.eup %1903  ;;  %1929 = vlog2.f32 %v705_v7  ;;  %v592_v7 = vand.u32 2147483647, %v3016_v30  ;;  %v792_v53 = vsub.f32 %v3204_v26, %v734_v63  ;;  %v738_v63 = vmul.f32 0.6931472, %v1896_v45 }
 0x271   :  { %v1906_v25 = vpop.eup %1905  ;;  %1931 = vlog2.f32 %v706_v48  ;;  %v709_v5 = vadd.f32 1.0, %v1904_v61  ;;  %v681_v47 = vmul.f32 1.442695, %v622_v2  ;;  %v683_v61 = vmul.f32 1.442695, %v623_v51 }
 0x272   :  { %v1908_v38 = vpop.eup %1907  ;;  %1933 = vpow2.f32 %v677_v36  ;;  %v624_v56 = vsub.f32 0.0, %v592_v7  ;;  %v1504_v23 = vmul.f32 %v2496_v9, %v792_v53  ;;  %v3205_v2 = vmin.f32 %v2785_v0, 0.0 }
 0x273   :  { %v1910_v46 = vpop.eup %1909  ;;  %1935 = vlog2.f32 %v707_v17  ;;  %v740_v36 = vmul.f32 0.6931472, %v1902_v28  ;;  %v742_v48 = vmul.f32 0.6931472, %v1906_v25  ;;  %v593_v19 = vand.u32 2147483647, %v3032_v12 }
 0x274   :  { %v1912_v15 = vpop.eup %1911  ;;  %1937 = vlog2.f32 %v708_v1  ;;  %v685_v26 = vmul.f32 1.442695, %v624_v56  ;;  %v793_v7 = vsub.f32 %v3205_v2, %v736_v29  ;;  %v3206_v9 = vmin.f32 %v2792_v21, 0.0  ;;  %v3049_v1 = vpop.f32.mrf.mxu1 }
 0x275   :  { %v1914_v42 = vpop.eup %1913  ;;  %1939 = vlog2.f32 %v709_v5  ;;  %v625_v53 = vsub.f32 0.0, %v593_v19  ;;  %v3207_v5 = vmin.f32 %v2802_v52, 0.0  ;;  %v710_v2 = vadd.f32 1.0, %v1912_v15 }
 0x276   :  { %v1916_v33 = vpop.eup %1915  ;;  %v711_v32 = vadd.f32 1.0, %v1914_v42  ;;  %1941 = vpow2.f32 %v681_v47  ;;  %v794_v0 = vsub.f32 %v3206_v9, %v738_v63  ;;  %v1553_v42 = vadd.f32 %v2941_v10, %v1504_v23 }
 0x277   :  { %v1918_v17 = vpop.eup %1917  ;;  %v713_v56 = vadd.f32 1.0, %v1916_v33  ;;  %1943 = vpow2.f32 %v683_v61  ;;  %v1505_v28 = vmul.f32 %v2498_v24, %v793_v7  ;;  %v795_v47 = vsub.f32 %v3207_v5, %v740_v36  ;;  %v3209_v24 = vld [vmem:[#allocation16_spill] sm:$0xff]  ;;  %v3210_v7 = vld [vmem:[#allocation17_spill] sm:$0xff] }
 0x278   :  { %v1920_v34 = vpop.eup %1919  ;;  %1945 = vpow2.f32 %v685_v26  ;;  %v3208_v61 = vmin.f32 %v2816_v6, 0.0  ;;  %v687_v9 = vmul.f32 1.442695, %v625_v53  ;;  %v744_v19 = vmul.f32 0.6931472, %v1908_v38 }
 0x279   :  { %v1922_v31 = vpop.eup %1921  ;;  %1947 = vlog2.f32 %v711_v32  ;;  %v746_v29 = vmul.f32 0.6931472, %v1910_v46  ;;  %v1506_v23 = vmul.f32 %v3209_v24, %v794_v0  ;;  %v594_v15 = vand.u32 2147483647, %v3049_v1 }
 0x27a   :  { %v1924_v51 = vpop.eup %1923  ;;  %v796_v21 = vsub.f32 %v3208_v61, %v742_v48  ;;  %v715_v63 = vadd.f32 1.0, %v1922_v31  ;;  %1949 = vlog2.f32 %v713_v56  ;;  %v1507_v5 = vmul.f32 %v3210_v7, %v795_v47  ;;  %v3211_v48 = vld [vmem:[#allocation18_spill] sm:$0xff] }
 0x27b   :  { %v1926_v25 = vpop.eup %1925  ;;  %v712_v45 = vadd.f32 1.0, %v1924_v51  ;;  %1951 = vpow2.f32 %v687_v9  ;;  %v748_v6 = vmul.f32 0.6931472, %v1918_v17  ;;  %v750_v53 = vmul.f32 0.6931472, %v1920_v34 }
 0x27c   :  { %v1928_v33 = vpop.eup %1927  ;;  %1953 = vlog2.f32 %v710_v2  ;;  %v714_v32 = vadd.f32 1.0, %v1926_v25  ;;  %v1508_v31 = vmul.f32 %v3211_v48, %v796_v21  ;;  %v626_v38 = vsub.f32 0.0, %v594_v15 }
 0x27d   :  { %v1930_v26 = vpop.eup %1929  ;;  %v717_v52 = vadd.f32 1.0, %v1928_v33  ;;  %1955 = vlog2.f32 %v715_v63  ;;  %v3212_v56 = vmin.f32 %v2830_v57, 0.0  ;;  %v3213_v0 = vmin.f32 %v2843_v43, 0.0 }
 0x27e   :  { %v1932_v10 = vpop.eup %1931  ;;  %v752_v61 = vmul.f32 0.6931472, %v1930_v26  ;;  %1957 = vlog2.f32 %v712_v45  ;;  %v689_v17 = vmul.f32 1.442695, %v626_v38  ;;  %v1533_v25 = vadd.f32 %v2945_v41, %v1505_v28 }
 0x27f   :  { %v1934_v36 = vpop.eup %1933  ;;  %v797_v51 = vsub.f32 %v3212_v56, %v744_v19  ;;  %v798_v33 = vsub.f32 %v3213_v0, %v746_v29  ;;  %v754_v9 = vmul.f32 0.6931472, %v1932_v10  ;;  %1959 = vlog2.f32 %v717_v52  ;;  %v3216_v52 = vld [vmem:[#allocation19_spill] sm:$0xff] }
 0x280   :  { %v1936_v46 = vpop.eup %1935  ;;  %v716_v24 = vadd.f32 1.0, %v1934_v36  ;;  %v1554_v2 = vadd.f32 %v1553_v42, %v1506_v23  ;;  %v3214_v34 = vmin.f32 %v2851_v40, 0.0  ;;  %1961 = vlog2.f32 %v714_v32  ;;  %v3218_v40 = vld [vmem:[#allocation20_spill] sm:$0xff]  ;;  %v3220_v32 = vld [vmem:[#allocation21_spill] sm:$0xff] }
 0x281   :  { %v1938_v47 = vpop.eup %1937  ;;  %v3215_v57 = vmin.f32 %v2862_v54, 0.0  ;;  %v756_v43 = vmul.f32 0.6931472, %v1936_v46  ;;  %v554_v29 = vmin.f32 %v2935_v60, 0.0  ;;  %1963 = vpow2.f32 %v689_v17 }
 0x282   :  { %v799_v21 = vsub.f32 %v3214_v34, %v748_v6  ;;  %v1940_v63 = vpop.eup %1939  ;;  %v1534_v26 = vadd.f32 %v1533_v25, %v1507_v5  ;;  %v1555_v10 = vadd.f32 %v1554_v2, %v1508_v31  ;;  %v1509_v15 = vmul.f32 %v3216_v52, %v797_v51  ;;  %v3221_v31 = vld [vmem:[#allocation22_spill] sm:$0xff]  ;;  %v3224_v25 = vld [vmem:[#allocation24_spill] sm:$0xff] }
 0x283   :  { %v800_v19 = vsub.f32 %v3215_v57, %v750_v53  ;;  %v1942_v45 = vpop.eup %1941  ;;  %v3217_v41 = vmin.f32 %v2869_v22, 0.0  ;;  %v1510_v23 = vmul.f32 %v3218_v40, %v798_v33  ;;  %v3219_v36 = vmin.f32 %v2882_v11, 0.0 }
 0x284   :  { %v1944_v28 = vpop.eup %1943  ;;  %1965 = vlog2.f32 %v716_v24  ;;  %v718_v54 = vadd.f32 1.0, %v1942_v45  ;;  %v1511_v48 = vmul.f32 %v3220_v32, %v799_v21  ;;  %v758_v53 = vmul.f32 0.6931472, %v1938_v47 }
 0x285   :  { %v801_v42 = vsub.f32 %v3217_v41, %v752_v61  ;;  %v802_v7 = vsub.f32 %v3219_v36, %v754_v9  ;;  %v1946_v6 = vpop.eup %1945  ;;  %v760_v38 = vmul.f32 0.6931472, %v1940_v63  ;;  %v719_v5 = vadd.f32 1.0, %v1944_v28  ;;  %v3223_v61 = vld [vmem:[#allocation23_spill] sm:$0xff] }
 0x286   :  { %v1512_v46 = vmul.f32 %v3221_v31, %v800_v19  ;;  %v3222_v56 = vmin.f32 %v2885_v18, 0.0  ;;  %1967 = vlog2.f32 %v718_v54  ;;  %v720_v51 = vadd.f32 1.0, %v1946_v6  ;;  %v1948_v0 = vpop.eup %1947  ;;  %v3229_v6 = vld [vmem:[#allocation27_spill] sm:$0xff] }
 0x287   :  { %v1535_v33 = vadd.f32 %v1534_v26, %v1509_v15  ;;  %v1513_v11 = vmul.f32 %v3223_v61, %v801_v42  ;;  %v555_v9 = vmin.f32 %v2948_v44, 0.0  ;;  %1969 = vlog2.f32 %v719_v5  ;;  %v1950_v24 = vpop.eup %1949  ;;  %v3227_v26 = vld [vmem:[#allocation25_spill] sm:$0xff] }
 0x288   :  { %v803_v22 = vsub.f32 %v3222_v56, %v756_v43  ;;  %v1556_v17 = vadd.f32 %v1555_v10, %v1510_v23  ;;  %v1514_v47 = vmul.f32 %v3224_v25, %v802_v7  ;;  %v556_v2 = vmin.f32 %v2963_v37, 0.0  ;;  %v1952_v34 = vpop.eup %1951  ;;  %v3228_v7 = vld [vmem:[#allocation26_spill] sm:$0xff] }
 0x289   :  { %1971 = vlog2.f32 %v720_v51  ;;  %v1536_v21 = vadd.f32 %v1535_v33, %v1511_v48  ;;  %v3225_v18 = vmin.f32 %v2897_v13, 0.0  ;;  %v3226_v57 = vmin.f32 %v2901_v35, 0.0  ;;  %v1954_v45 = vpop.eup %1953  ;;  %v3245_v37 = vld [vmem:[#allocation38_spill] sm:$0xff] }
 0x28a   :  { %v557_v43 = vmin.f32 %v2972_v59, 0.0  ;;  %v1557_v44 = vadd.f32 %v1556_v17, %v1512_v46  ;;  %v1515_v52 = vmul.f32 %v3227_v26, %v803_v22  ;;  %v764_v10 = vmul.f32 0.6931472, %v1948_v0  ;;  %v1956_v41 = vpop.eup %1955  ;;  %v3231_v46 = vld [vmem:[#allocation13_spill] sm:$0xff]  ;;  %v3232_v22 = vld [vmem:[#allocation14_spill] sm:$0xff] }
 0x28b   :  { %v804_v63 = vsub.f32 %v3225_v18, %v758_v53  ;;  %v805_v19 = vsub.f32 %v3226_v57, %v760_v38  ;;  %v721_v15 = vadd.f32 1.0, %v1952_v34  ;;  %v1537_v42 = vadd.f32 %v1536_v21, %v1513_v11  ;;  %v1958_v23 = vpop.eup %1957  ;;  %v3235_v21 = vld [vmem:[#allocation29_spill] sm:$0xff] }
 0x28c   :  { %v558_v28 = vmin.f32 %v2985_v58, 0.0  ;;  %v559_v40 = vmin.f32 %v2995_v3, 0.0  ;;  %v560_v13 = vmin.f32 %v3016_v30, 0.0  ;;  %v1558_v36 = vadd.f32 %v1557_v44, %v1514_v47  ;;  %v1960_v59 = vpop.eup %1959 }
 0x28d   :  { %v768_v35 = vmul.f32 0.6931472, %v1950_v24  ;;  %1973 = vlog2.f32 %v721_v15  ;;  %v1516_v54 = vmul.f32 %v3228_v7, %v804_v63  ;;  %v1517_v32 = vmul.f32 %v3229_v6, %v805_v19  ;;  %v1962_v53 = vpop.eup %1961 }
 0x28e   :  { %v762_v48 = vmul.f32 0.6931472, %v1954_v45  ;;  %v1538_v3 = vadd.f32 %v1537_v42, %v1515_v52  ;;  %v3230_v38 = vmin.f32 %v2917_v20, 0.0  ;;  %v772_v31 = vmul.f32 0.6931472, %v1956_v41  ;;  %v1964_v56 = vpop.eup %1963  ;;  %v3237_v52 = vld [vmem:[#allocation31_spill] sm:$0xff] }
 0x28f   :  { %vm1265_vm11 = vcmp.eq.s32.totalorder %v2112_v4, %v3231_v46  ;;  %v766_v49 = vmul.f32 0.6931472, %v1958_v23  ;;  %vm1401_vm12 = vcmp.eq.s32.totalorder %v2112_v4, %v3232_v22  ;;  %v1711_v51 = vsel %vm858_vm9, 1.0, %v3198_v8  ;;  %v3238_v42 = vld [vmem:[#allocation28_spill] sm:$0xff] }
 0x290   :  { %v807_v5 = vsub.f32 %v3230_v38, %v764_v10  ;;  %vm1130_vm13 = vcmp.eq.s32.totalorder %v2112_v4, %v2325_v55  ;;  %v3233_v50 = vmin.f32 %v2927_v27, 0.0  ;;  %v776_v33 = vmul.f32 0.6931472, %v1960_v59  ;;  %v3239_v55 = vld [vmem:[#allocation33_spill] sm:$0xff] }
 0x291   :  { %v722_v20 = vadd.f32 1.0, %v1964_v56  ;;  %v1743_v61 = vsel %vm994_vm10, 1.0, %v3198_v8  ;;  %v1966_v11 = vpop.eup %1965  ;;  %v1559_v24 = vadd.f32 %v1558_v36, %v1516_v54  ;;  %v1539_v17 = vadd.f32 %v1538_v3, %v1517_v32  ;;  %v3240_v32 = vld [vmem:[#allocation15_spill] sm:$0xff]  ;;  %v3243_v56 = vld [vmem:[#allocation32_spill] sm:$0xff] }
 0x292   :  { %v809_v0 = vsub.f32 %v3233_v50, %v768_v35  ;;  %v3234_v25 = vmin.f32 %v2910_v39, 0.0  ;;  %v770_v34 = vmul.f32 0.6931472, %v1962_v53  ;;  %v1519_v18 = vmul.f32 %v3235_v21, %v807_v5  ;;  %v3248_v21 = vld [vmem:[#allocation36_spill] sm:$0xff] }
 0x293   :  { %v811_v63 = vsub.f32 %v555_v9, %v772_v31  ;;  %v1806_v27 = vsel %vm1265_vm11, 1.0, %v3198_v8  ;;  %1975 = vlog2.f32 %v722_v20  ;;  %v1968_v57 = vpop.eup %1967  ;;  %v3236_v19 = vmin.f32 %v2923_v14, 0.0 }
 0x294   :  { %v806_v47 = vsub.f32 %v3234_v25, %v762_v48  ;;  %v1838_v39 = vsel %vm1401_vm12, 1.0, %v3198_v8  ;;  %v1090_v44 = vadd.f32 %v1743_v61, %v1711_v51  ;;  %v1775_v9 = vsel %vm1130_vm13, 1.0, %v3198_v8  ;;  %v1970_v26 = vpop.eup %1969  ;;  %v3247_v25 = vld [vmem:[#allocation34_spill] sm:$0xff] }
 0x295   :  { %v808_v45 = vsub.f32 %v3236_v19, %v766_v49  ;;  %v1521_v10 = vmul.f32 %v3237_v52, %v809_v0  ;;  %v774_v15 = vmul.f32 0.6931472, %v1966_v11  ;;  %v813_v41 = vsub.f32 %v557_v43, %v776_v33  ;;  %v3241_v43 = vld [vmem:[#allocation30_spill] sm:$0xff]  ;;  %v3244_v0 = vld [vmem:[#allocation37_spill] sm:$0xff] }
 0x296   :  { %vm1266_vm14 = vcmp.eq.s32.totalorder %v2112_v4, %v2339_v62  ;;  %v1972_v14 = vpop.eup %1971  ;;  %v1518_v23 = vmul.f32 %v3238_v42, %v806_v47  ;;  %v810_v36 = vsub.f32 %v554_v29, %v770_v34  ;;  %v780_v35 = vmul.f32 0.6931472, %v1970_v26  ;;  %v3242_v29 = vld [vmem:[#allocation35_spill] sm:$0xff] }
 0x297   :  { %v1361_v59 = vadd.f32 %v1806_v27, %v3034_v16  ;;  %v1540_v7 = vadd.f32 %v1539_v17, %v1519_v18  ;;  %v1523_v54 = vmul.f32 %v3239_v55, %v811_v63  ;;  %v778_v6 = vmul.f32 0.6931472, %v1968_v57 }
 0x298   :  { %vm1402_vm15 = vcmp.eq.s32.totalorder %v2112_v4, %v3240_v32  ;;  %v1520_v48 = vmul.f32 %v3241_v43, %v808_v45  ;;  %v815_v53 = vsub.f32 %v559_v40, %v780_v35  ;;  %v1226_v62 = vadd.f32 %v1775_v9, %v1090_v44 }
 0x299   :  { %v1807_v3 = vsel %vm1266_vm14, 1.0, %v3198_v8  ;;  %v1541_v38 = vadd.f32 %v1540_v7, %v1521_v10  ;;  %v812_v60 = vsub.f32 %v556_v2, %v774_v15  ;;  %v1525_v5 = vmul.f32 %v3242_v29, %v813_v41  ;;  %v3246_v2 = vld [vmem:[#allocation39_spill] sm:$0xff] }
 0x29a   :  { %v782_v16 = vmul.f32 0.6931472, %v1972_v14  ;;  %v1974_v31 = vpop.eup %1973  ;;  %v1560_v46 = vadd.f32 %v1559_v24, %v1518_v23  ;;  %v1522_v49 = vmul.f32 %v3243_v56, %v810_v36  ;;  %v561_v22 = vmin.f32 %v3032_v12, 0.0 }
 0x29b   :  { %v1497_v51 = vadd.f32 %v1838_v39, %v1361_v59  ;;  %v1542_v50 = vadd.f32 %v1541_v38, %v1523_v54  ;;  %v814_v40 = vsub.f32 %v558_v28, %v778_v6  ;;  %v1527_v33 = vmul.f32 %v3244_v0, %v815_v53 }
 0x29c   :  { %v784_v20 = vmul.f32 0.6931472, %v1974_v31  ;;  %v1561_v61 = vadd.f32 %v1560_v46, %v1520_v48  ;;  %v1496_v11 = vadd.f32 %v3246_v2, %v3245_v37  ;;  %v1362_v17 = vadd.f32 %v1807_v3, %v1226_v62  ;;  %v3249_v62 = vld [vmem:[#allocation12_spill] sm:$0xff] }
 0x29d   :  { %v1839_v24 = vsel %vm1402_vm15, 1.0, %v3198_v8  ;;  %v1524_v12 = vmul.f32 %v3247_v25, %v812_v60  ;;  %v1543_v47 = vadd.f32 %v1542_v50, %v1525_v5  ;;  %v816_v58 = vsub.f32 %v560_v13, %v782_v16 }
 0x29e   :  { %v817_v28 = vsub.f32 %v561_v22, %v784_v20  ;;  %v1562_v34 = vadd.f32 %v1561_v61, %v1522_v49  ;;  %v1526_v18 = vmul.f32 %v3248_v21, %v814_v40  ;;  %v562_v19 = vmin.f32 %v3049_v1, 0.0 }
 0x29f   :  { %v1544_v63 = vadd.f32 %v1543_v47, %v1527_v33  ;;  %v1498_v45 = vadd.f32 %v1839_v24, %v1362_v17  ;;  %v1528_v44 = vmul.f32 %v1496_v11, %v816_v58  ;;  %v2074_v32 = vmov 1966171168  }
 0x2a0   :  { %v1529_v27 = vmul.f32 %v1497_v51, %v817_v28  ;;  %v1976_v57 = vpop.eup %1975  ;;  %v1563_v39 = vadd.f32 %v1562_v34, %v1524_v12  ;;  %v1581_v43 = vunpack.c.l.s4 %v2074_v32  ;;  %v3250_v5 = vlaneseq }
 0x2a1   :  { %v786_v8 = vmul.f32 0.6931472, %v1976_v57 }
 0x2a2   :  { %v1545_v4 = vadd.f32 %v1544_v63, %v1529_v27  ;;  %v1564_v9 = vadd.f32 %v1563_v39, %v1526_v18  ;;  %v1582_v48 = vunpack.c.0.s8 %v1581_v43  ;;  %vm1597_vm0 = vcmp.lt.s32.totalorder %v3250_v5, 256 }
 0x2a3   :  { %v818_v52 = vsub.f32 %v562_v19, %v786_v8 }
 0x2a4   :  { %v1546_v26 = vrot.slane %v1545_v4, 4  ;;  %v1565_v10 = vadd.f32 %v1564_v9, %v1528_v44  ;;  %v1585_v3 = vsub.s32 %v1582_v48, %v3249_v62 }
 0x2a5   :  { %v1530_v13 = vmul.f32 %v1498_v45, %v818_v52 }
 0x2a6   :  { %v1547_v30 = vadd.f32 %v1546_v26, %v1545_v4 }
 0x2a7   :  { %v1566_v41 = vadd.f32 %v1565_v10, %v1530_v13 }
 0x2a8   :  { %v1548_v15 = vrot.slane %v1547_v30, 2 }
 0x2a9   :  { %v1567_v42 = vrot.slane %v1566_v41, 4 }
 0x2aa   :  { %v1549_v14 = vadd.f32 %v1548_v15, %v1547_v30 }
 0x2ab   :  { %v1568_v36 = vadd.f32 %v1567_v42, %v1566_v41 }
 0x2ac   :  { %v1550_v23 = vrot.slane %v1549_v14, 1 }
 0x2ad   :  { %v1569_v35 = vrot.slane %v1568_v36, 2 }
 0x2ae   :  { %v1551_v59 = vadd.f32 %v1550_v23, %v1549_v14 }
 0x2af   :  { %v1570_v1 = vadd.f32 %v1569_v35, %v1568_v36 }
 0x2b0   :  { %v1573_v55 = vmul.f32 1.442695, %v1551_v59 }
 0x2b1   :  { %v1571_v7 = vrot.slane %v1570_v1, 1 }
 0x2b2   :  { %1977 = vpow2.f32 %v1573_v55 }
 0x2b3   :  { %v1572_v54 = vadd.f32 %v1571_v7, %v1570_v1 }
 0x2b5   :  { %v1575_v6 = vmul.f32 1.442695, %v1572_v54 }
 0x2b7   :  { %1979 = vpow2.f32 %v1575_v6 }
 0x2bf   :  { %v1978_v53 = vpop.eup %1977 }
 0x2c4   :  { %v1980_v38 = vpop.eup %1979 }
 0x2c5   :  { %v1579_v60 = vcombine.low %v1978_v53, %v1980_v38 }
 0x2c7   :  { %v1586_v29 = vrot.slane %v1579_v60, %v1585_v3 }
 0x2c9   :  { %v1593_v16 = vrot.slane %v1586_v29, %v1585_v3 }
 0x2cb   :  { %1599 = vst.msk [vmem:[#allocation8] sm:$0x3] %vm1597_vm0, %v1593_v16 }
 0x2cc   :  { %2052 = shalt.err (!%p2049_p5)
}
 0x2cd   :  { %1609 = dma.vmem_to_hbm [thread:$0]  %s1607_s2, 32, %s3164_s3, [#allocation4]  }
 0x2ce   :  { %2065 = dma.done.wait [#allocation4], 32  }
 0x2cf   :  { %2066 = vsyncadd [#allocation4], 4294967264 }
 0x2d0   :  { %1613 = vsyncpa [#allocation3], 1 }
 0x2d1   :  { %1614 = vsyncpa [#allocation6], 1 }
 0x2d2   :  { %1615 = vsyncpa [#allocation4], 1 }

</bundles_post_ra>
